<compile_context>
chip_gen: v5e
topology: v5e:2x2
jax: 0.10.0
libtpu: 0.0.40
codegen_flags: <defaults>
</compile_context>

<pallas_src>
import jax
import jax.numpy as jnp
from jax import lax
from jax.experimental import pallas as pl
from jax.experimental.pallas import tpu as pltpu

LANE = 128
BN_EPS = 1e-5


def _round_up(x, m):
    return (x + m - 1) // m * m


# -----------------------------------------------------------------------------
# Fused kernel: conv(3x3, zero pad) + ReLU -> global avg pool -> FC(+BN folded)
#               -> Dropout(eval=id) -> classifier Linear.
# -----------------------------------------------------------------------------
def _make_fused_kernel(tile_rows, width, inv_hw, num_row_blocks):
    TR, W = tile_rows, width

    def kernel(xm_ref, xt_ref, xb_ref,   # image row block + 1-row halos (bf16)
               wc_ref, bc_ref,           # im2col conv weight (9*Cin, Cp) bf16, bias (1, Cp) f32
               w1_ref, b1_ref,           # FC linear with BatchNorm folded, (Cp, Fp)/(1, Fp) f32
               w2_ref, b2_ref,           # classifier, (Fp, Np)/(1, Np) f32
               o_ref,                    # logits output block (1, 1, Np) f32
               xpad_ref, acc_ref):       # scratch: zero-padded block, pooled-sum accumulator
        r = pl.program_id(1)
        Cin = xm_ref.shape[-1]

        # ---- zero-padded input block (halo rows masked at the image edges) ----
        xpad_ref[...] = jnp.zeros_like(xpad_ref)
        xpad_ref[1:TR + 1, 1:W + 1, :] = xm_ref[0]

        @pl.when(r > 0)
        def _():
            xpad_ref[0:1, 1:W + 1, :] = xt_ref[0]

        @pl.when(r < num_row_blocks - 1)
        def _():
            xpad_ref[TR + 1:TR + 2, 1:W + 1, :] = xb_ref[0]

        # ---- im2col: one (TR*W, 9*Cin) patch matrix -> single MXU matmul ----
        pieces = [xpad_ref[kh:kh + TR, kw:kw + W, :]
                  for kh in range(3) for kw in range(3)]
        patch = jnp.concatenate(pieces, axis=-1).reshape(TR * W, 9 * Cin)

        conv = jnp.dot(patch, wc_ref[...], preferred_element_type=jnp.float32)
        conv = jnp.maximum(conv + bc_ref[...], 0.0)            # bias + ReLU (f32)

        # ---- fused global average pool: accumulate sums across row blocks ----
        @pl.when(r == 0)
        def _():
            acc_ref[...] = jnp.zeros_like(acc_ref)

        acc_ref[...] += jnp.sum(conv, axis=0, keepdims=True)

        # ---- head, only on the last row block of this image ----
        @pl.when(r == num_row_blocks - 1)
        def _():
            pooled = acc_ref[...] * inv_hw                      # (1, Cp)
            y = jnp.dot(pooled, w1_ref[...],
                        preferred_element_type=jnp.float32) + b1_ref[...]
            # FCLayer Dropout(p=0.5): identity in eval mode.
            # TODO(synk): training-mode dropout / BN batch statistics are not implemented.
            logits = jnp.dot(y, w2_ref[...],
                             preferred_element_type=jnp.float32) + b2_ref[...]
            o_ref[0] = logits

    return kernel


# -----------------------------------------------------------------------------
# Parameter init (matches the PyTorch init scheme of the original module).
# -----------------------------------------------------------------------------
def init_params(key, cin=3, cfeat=32, fc_dim=32, n_classes=8):
    ks = jax.random.split(key, 4)
    # backbone stand-in conv: kaiming_normal fan_in -> std = sqrt(2 / (k*k*cin))
    w_conv = jax.random.normal(ks[0], (3, 3, cin, cfeat), jnp.float32) * jnp.sqrt(
        2.0 / (3 * 3 * cin))
    b_conv = jnp.zeros((1, cfeat), jnp.float32)
    # FCLayer Linear: kaiming_normal(a=0, mode='fan_out') -> std = sqrt(2/fc_dim)
    w1 = jax.random.normal(ks[1], (cfeat, fc_dim), jnp.float32) * jnp.sqrt(2.0 / fc_dim)
    b1 = jnp.zeros((1, fc_dim), jnp.float32)
    # BatchNorm1d: weight ~ N(1.0, 0.02), bias = 0, running stats (0, 1)
    gamma = 1.0 + 0.02 * jax.random.normal(ks[2], (1, fc_dim), jnp.float32)
    beta = jnp.zeros((1, fc_dim), jnp.float32)
    rm = jnp.zeros((1, fc_dim), jnp.float32)
    rv = jnp.ones((1, fc_dim), jnp.float32)
    # Classifier Linear: weight ~ N(0, 0.001), bias = 0
    w2 = 0.001 * jax.random.normal(ks[3], (fc_dim, n_classes), jnp.float32)
    b2 = jnp.zeros((1, n_classes), jnp.float32)
    return dict(w_conv=w_conv, b_conv=b_conv, w1=w1, b1=b1, gamma=gamma,
                beta=beta, rm=rm, rv=rv, w2=w2, b2=b2)


# -----------------------------------------------------------------------------
# Wrapper
# -----------------------------------------------------------------------------
def mcsnet_forward(x_nchw, params, *, tile_rows=8):
    """Fused MCSNet forward (eval mode). x_nchw: (B, Cin, H, W)."""
    x = jnp.transpose(x_nchw, (0, 2, 3, 1)).astype(jnp.bfloat16)   # NHWC, bf16
    B, H, W, Cin = x.shape

    TR = min(tile_rows, H)
    assert H % TR == 0, "H must be divisible by the row tile"
    R = H // TR

    w_conv = params["w_conv"]                     # (3, 3, Cin, Cout), HWIO
    Cout = w_conv.shape[-1]
    fc_dim = params["w1"].shape[-1]
    n_classes = params["w2"].shape[-1]
    Cp = _round_up(Cout, LANE)
    Fp = _round_up(fc_dim, LANE)
    Np = _round_up(n_classes, LANE)

    # Conv weights in im2col layout, zero-padded to 128 output lanes, bf16.
    wc = jnp.pad(w_conv.reshape(9 * Cin, Cout),
                 ((0, 0), (0, Cp - Cout))).astype(jnp.bfloat16)
    bc = jnp.pad(params["b_conv"], ((0, 0), (0, Cp - Cout))).astype(jnp.float32)

    # Fold eval-mode BatchNorm1d into the FC linear, then pad to 128 lanes.
    scale = params["gamma"] * lax.rsqrt(params["rv"] + BN_EPS)        # (1, fc_dim)
    w1f = params["w1"] * scale                                        # (Cout, fc_dim)
    b1f = (params["b1"] - params["rm"]) * scale + params["beta"]      # (1, fc_dim)
    w1f = jnp.pad(w1f, ((0, Cp - Cout), (0, Fp - fc_dim))).astype(jnp.float32)
    b1f = jnp.pad(b1f, ((0, 0), (0, Fp - fc_dim))).astype(jnp.float32)
    w2p = jnp.pad(params["w2"], ((0, Fp - fc_dim), (0, Np - n_classes))).astype(jnp.float32)
    b2p = jnp.pad(params["b2"], ((0, 0), (0, Np - n_classes))).astype(jnp.float32)

    kernel = _make_fused_kernel(TR, W, 1.0 / (H * W), R)

    const2d = lambda b, r: (0, 0)
    in_specs = [
        # main image row block
        pl.BlockSpec((1, TR, W, Cin), lambda b, r: (b, r, 0, 0)),
        # 1-row top / bottom halos (edge-clamped index; masked in-kernel)
        pl.BlockSpec((1, 1, W, Cin),
                     lambda b, r: (b, jnp.maximum(r * TR - 1, 0), 0, 0)),
        pl.BlockSpec((1, 1, W, Cin),
                     lambda b, r: (b, jnp.minimum(r * TR + TR, H - 1), 0, 0)),
        # weights / biases: small full arrays, stay resident in VMEM across the grid
        pl.BlockSpec((9 * Cin, Cp), const2d),
        pl.BlockSpec((1, Cp), const2d),
        pl.BlockSpec((Cp, Fp), const2d),
        pl.BlockSpec((1, Fp), const2d),
        pl.BlockSpec((Fp, Np), const2d),
        pl.BlockSpec((1, Np), const2d),
    ]
    out_specs = pl.BlockSpec((1, 1, Np), lambda b, r: (b, 0, 0))

    logits_pad = pl.pallas_call(
        kernel,
        out_shape=jax.ShapeDtypeStruct((B, 1, Np), jnp.float32),
        grid=(B, R),
        in_specs=in_specs,
        out_specs=out_specs,
        scratch_shapes=[
            pltpu.VMEM((TR + 2, W + 2, Cin), jnp.bfloat16),   # zero-padded input block
            pltpu.VMEM((1, Cp), jnp.float32),                 # pooled-sum accumulator
        ],
        compiler_params=pltpu.CompilerParams(
            dimension_semantics=("parallel", "arbitrary"),
            vmem_limit_bytes=32 * 1024 * 1024,
        ),
    )(x, x, x, wc, bc, w1f, b1f, w2p, b2p)

    return logits_pad[:, 0, :n_classes]


# -----------------------------------------------------------------------------
# Pure-JAX reference (same bf16 quantization of the conv operands).
# -----------------------------------------------------------------------------
def mcsnet_reference(x_nchw, params):
    x = jnp.transpose(x_nchw, (0, 2, 3, 1)).astype(jnp.bfloat16).astype(jnp.float32)
    w = params["w_conv"].astype(jnp.bfloat16).astype(jnp.float32)
    feat = lax.conv_general_dilated(
        x, w, window_strides=(1, 1), padding="SAME",
        dimension_numbers=("NHWC", "HWIO", "NHWC"))
    feat = jnp.maximum(feat + params["b_conv"].reshape(1, 1, 1, -1), 0.0)
    pooled = jnp.mean(feat, axis=(1, 2))                               # (B, Cout)
    y = pooled @ params["w1"] + params["b1"]
    y = (y - params["rm"]) * lax.rsqrt(params["rv"] + BN_EPS) * params["gamma"] + params["beta"]
    return y @ params["w2"] + params["b2"]


if __name__ == "__main__":
    key = jax.random.PRNGKey(0)
    k_x, k_p = jax.random.split(key)

    # Small NCHW image input consistent with the module's forward.
    x = jax.random.normal(k_x, (2, 3, 16, 16), jnp.float32)
    params = init_params(k_p, cin=3, cfeat=32, fc_dim=32, n_classes=8)

    logits = jax.block_until_ready(mcsnet_forward(x, params))
    ref = jax.block_until_ready(mcsnet_reference(x, params))

    assert logits.shape == (2, 8), logits.shape
    assert jnp.all(jnp.isfinite(logits))
    assert jnp.allclose(logits, ref, rtol=5e-2, atol=2e-4), float(
        jnp.max(jnp.abs(logits - ref)))
    print("KERNEL_OK")
</pallas_src>

<mosaic_0001>
module attributes {stable_mosaic.version = 11 : i64} {
  func.func @kernel(%arg0: i32, %arg1: i32, %arg2: memref<1x8x16x3xbf16, #tpu.memory_space<vmem>>, %arg3: memref<1x1x16x3xbf16, #tpu.memory_space<vmem>>, %arg4: memref<1x1x16x3xbf16, #tpu.memory_space<vmem>>, %arg5: memref<27x128xbf16, #tpu.memory_space<vmem>>, %arg6: memref<1x128xf32, #tpu.memory_space<vmem>>, %arg7: memref<128x128xf32, #tpu.memory_space<vmem>>, %arg8: memref<1x128xf32, #tpu.memory_space<vmem>>, %arg9: memref<128x128xf32, #tpu.memory_space<vmem>>, %arg10: memref<1x128xf32, #tpu.memory_space<vmem>>, %arg11: memref<1x1x128xf32, #tpu.memory_space<vmem>>, %arg12: memref<10x18x3xbf16, #tpu.memory_space<vmem>>, %arg13: memref<1x128xf32, #tpu.memory_space<vmem>>) attributes {dimension_semantics = [#tpu.dimension_semantics<parallel>, #tpu.dimension_semantics<arbitrary>], iteration_bounds = array<i64: 2, 2>, scalar_prefetch = 0 : i64, scratch_operands = 2 : i64, tpu.core_type = #tpu.core_type<tc>, window_params = [{transform_indices = @transform_0, window_bounds = array<i64: 1, 8, 16, 3>}, {transform_indices = @transform_1, window_bounds = array<i64: 1, 1, 16, 3>}, {transform_indices = @transform_2, window_bounds = array<i64: 1, 1, 16, 3>}, {pipeline_mode = #tpu.pipeline_mode<synchronous>, transform_indices = @transform_3, window_bounds = array<i64: 27, 128>}, {pipeline_mode = #tpu.pipeline_mode<synchronous>, transform_indices = @transform_4, window_bounds = array<i64: 1, 128>}, {pipeline_mode = #tpu.pipeline_mode<synchronous>, transform_indices = @transform_5, window_bounds = array<i64: 128, 128>}, {pipeline_mode = #tpu.pipeline_mode<synchronous>, transform_indices = @transform_6, window_bounds = array<i64: 1, 128>}, {pipeline_mode = #tpu.pipeline_mode<synchronous>, transform_indices = @transform_7, window_bounds = array<i64: 128, 128>}, {pipeline_mode = #tpu.pipeline_mode<synchronous>, transform_indices = @transform_8, window_bounds = array<i64: 1, 128>}, {transform_indices = @transform_9, window_bounds = array<i64: 1, 1, 128>}]} {
    %cst = arith.constant 0.000000e+00 : bf16
    %0 = vector.broadcast %cst : bf16 to vector<10x18x3xbf16>
    %c0 = arith.constant 0 : index
    %c0_0 = arith.constant 0 : index
    %c0_1 = arith.constant 0 : index
    %1 = vector.load %arg12[%c0, %c0_0, %c0_1] : memref<10x18x3xbf16, #tpu.memory_space<vmem>>, vector<10x18x3xbf16>
    tpu.vector_store %arg12[%c0, %c0_0, %c0_1], %0 {strides = array<i32>} : memref<10x18x3xbf16, #tpu.memory_space<vmem>>, vector<10x18x3xbf16>,
    %c0_2 = arith.constant 0 : index
    %c0_3 = arith.constant 0 : index
    %c0_4 = arith.constant 0 : index
    %c0_5 = arith.constant 0 : index
    %2 = vector.load %arg2[%c0_2, %c0_3, %c0_4, %c0_5] : memref<1x8x16x3xbf16, #tpu.memory_space<vmem>>, vector<1x8x16x3xbf16>
    %3 = vector.shape_cast %2 : vector<1x8x16x3xbf16> to vector<8x16x3xbf16>
    %c1 = arith.constant 1 : index
    %c1_6 = arith.constant 1 : index
    %c0_7 = arith.constant 0 : index
    %4 = vector.load %arg12[%c1, %c1_6, %c0_7] : memref<10x18x3xbf16, #tpu.memory_space<vmem>>, vector<8x16x3xbf16>
    tpu.vector_store %arg12[%c1, %c1_6, %c0_7], %3 {strides = array<i32>} : memref<10x18x3xbf16, #tpu.memory_space<vmem>>, vector<8x16x3xbf16>,
    %c0_i32 = arith.constant 0 : i32
    %5 = arith.cmpi sgt, %arg1, %c0_i32 : i32
    %6 = arith.extui %5 : i1 to i32
    %c0_i32_8 = arith.constant 0 : i32
    %7 = arith.cmpi ne, %6, %c0_i32_8 : i32
    scf.if %7 {
      %c0_51 = arith.constant 0 : index
      %c0_52 = arith.constant 0 : index
      %c0_53 = arith.constant 0 : index
      %c0_54 = arith.constant 0 : index
      %40 = vector.load %arg3[%c0_51, %c0_52, %c0_53, %c0_54] : memref<1x1x16x3xbf16, #tpu.memory_space<vmem>>, vector<1x1x16x3xbf16>
      %41 = vector.shape_cast %40 : vector<1x1x16x3xbf16> to vector<1x16x3xbf16>
      %c0_55 = arith.constant 0 : index
      %c1_56 = arith.constant 1 : index
      %c0_57 = arith.constant 0 : index
      %42 = vector.load %arg12[%c0_55, %c1_56, %c0_57] : memref<10x18x3xbf16, #tpu.memory_space<vmem>>, vector<1x16x3xbf16>
      tpu.vector_store %arg12[%c0_55, %c1_56, %c0_57], %41 {strides = array<i32>} : memref<10x18x3xbf16, #tpu.memory_space<vmem>>, vector<1x16x3xbf16>,
    } else {
    }
    %c1_i32 = arith.constant 1 : i32
    %8 = arith.cmpi slt, %arg1, %c1_i32 : i32
    %9 = arith.extui %8 : i1 to i32
    %c0_i32_9 = arith.constant 0 : i32
    %10 = arith.cmpi ne, %9, %c0_i32_9 : i32
    scf.if %10 {
      %c0_51 = arith.constant 0 : index
      %c0_52 = arith.constant 0 : index
      %c0_53 = arith.constant 0 : index
      %c0_54 = arith.constant 0 : index
      %40 = vector.load %arg4[%c0_51, %c0_52, %c0_53, %c0_54] : memref<1x1x16x3xbf16, #tpu.memory_space<vmem>>, vector<1x1x16x3xbf16>
      %41 = vector.shape_cast %40 : vector<1x1x16x3xbf16> to vector<1x16x3xbf16>
      %c9 = arith.constant 9 : index
      %c1_55 = arith.constant 1 : index
      %c0_56 = arith.constant 0 : index
      %42 = vector.load %arg12[%c9, %c1_55, %c0_56] : memref<10x18x3xbf16, #tpu.memory_space<vmem>>, vector<1x16x3xbf16>
      tpu.vector_store %arg12[%c9, %c1_55, %c0_56], %41 {strides = array<i32>} : memref<10x18x3xbf16, #tpu.memory_space<vmem>>, vector<1x16x3xbf16>,
    } else {
    }
    %c0_10 = arith.constant 0 : index
    %c0_11 = arith.constant 0 : index
    %c0_12 = arith.constant 0 : index
    %11 = vector.load %arg12[%c0_10, %c0_11, %c0_12] : memref<10x18x3xbf16, #tpu.memory_space<vmem>>, vector<8x16x3xbf16>
    %c0_13 = arith.constant 0 : index
    %c1_14 = arith.constant 1 : index
    %c0_15 = arith.constant 0 : index
    %12 = vector.load %arg12[%c0_13, %c1_14, %c0_15] : memref<10x18x3xbf16, #tpu.memory_space<vmem>>, vector<8x16x3xbf16>
    %c0_16 = arith.constant 0 : index
    %c2 = arith.constant 2 : index
    %c0_17 = arith.constant 0 : index
    %13 = vector.load %arg12[%c0_16, %c2, %c0_17] : memref<10x18x3xbf16, #tpu.memory_space<vmem>>, vector<8x16x3xbf16>
    %c1_18 = arith.constant 1 : index
    %c0_19 = arith.constant 0 : index
    %c0_20 = arith.constant 0 : index
    %14 = vector.load %arg12[%c1_18, %c0_19, %c0_20] : memref<10x18x3xbf16, #tpu.memory_space<vmem>>, vector<8x16x3xbf16>
    %c1_21 = arith.constant 1 : index
    %c1_22 = arith.constant 1 : index
    %c0_23 = arith.constant 0 : index
    %15 = vector.load %arg12[%c1_21, %c1_22, %c0_23] : memref<10x18x3xbf16, #tpu.memory_space<vmem>>, vector<8x16x3xbf16>
    %c1_24 = arith.constant 1 : index
    %c2_25 = arith.constant 2 : index
    %c0_26 = arith.constant 0 : index
    %16 = vector.load %arg12[%c1_24, %c2_25, %c0_26] : memref<10x18x3xbf16, #tpu.memory_space<vmem>>, vector<8x16x3xbf16>
    %c2_27 = arith.constant 2 : index
    %c0_28 = arith.constant 0 : index
    %c0_29 = arith.constant 0 : index
    %17 = vector.load %arg12[%c2_27, %c0_28, %c0_29] : memref<10x18x3xbf16, #tpu.memory_space<vmem>>, vector<8x16x3xbf16>
    %c2_30 = arith.constant 2 : index
    %c1_31 = arith.constant 1 : index
    %c0_32 = arith.constant 0 : index
    %18 = vector.load %arg12[%c2_30, %c1_31, %c0_32] : memref<10x18x3xbf16, #tpu.memory_space<vmem>>, vector<8x16x3xbf16>
    %c2_33 = arith.constant 2 : index
    %c2_34 = arith.constant 2 : index
    %c0_35 = arith.constant 0 : index
    %19 = vector.load %arg12[%c2_33, %c2_34, %c0_35] : memref<10x18x3xbf16, #tpu.memory_space<vmem>>, vector<8x16x3xbf16>
    %20 = tpu.concatenate %11, %12, %13, %14, %15, %16, %17, %18, %19 in 2 : vector<8x16x3xbf16>, vector<8x16x3xbf16>, vector<8x16x3xbf16>, vector<8x16x3xbf16>, vector<8x16x3xbf16>, vector<8x16x3xbf16>, vector<8x16x3xbf16>, vector<8x16x3xbf16>, vector<8x16x3xbf16> -> vector<8x16x27xbf16>
    %21 = vector.shape_cast %20 : vector<8x16x27xbf16> to vector<128x27xbf16>
    %c0_36 = arith.constant 0 : index
    %c0_37 = arith.constant 0 : index
    %22 = vector.load %arg5[%c0_36, %c0_37] : memref<27x128xbf16, #tpu.memory_space<vmem>>, vector<27x128xbf16>
    %cst_38 = arith.constant dense<0.000000e+00> : vector<128x128xf32>
    %23 = tpu.matmul %21, %22, %cst_38 {dimension_numbers = #tpu.dot_dimension_numbers<[1], [0], [0], [1], [0, 0, 1, 1], [], []>} : vector<128x27xbf16>, vector<27x128xbf16>, vector<128x128xf32> -> vector<128x128xf32>
    %c0_39 = arith.constant 0 : index
    %c0_40 = arith.constant 0 : index
    %24 = vector.load %arg6[%c0_39, %c0_40] : memref<1x128xf32, #tpu.memory_space<vmem>>, vector<1x128xf32>
    %25 = vector.broadcast %24 : vector<1x128xf32> to vector<128x128xf32>
    %26 = arith.addf %23, %25 : vector<128x128xf32>
    %cst_41 = arith.constant 0.000000e+00 : f32
    %27 = vector.broadcast %cst_41 : f32 to vector<128x128xf32>
    %28 = arith.maximumf %26, %27 : vector<128x128xf32>
    %c0_i32_42 = arith.constant 0 : i32
    %29 = arith.cmpi eq, %arg1, %c0_i32_42 : i32
    %30 = arith.extui %29 : i1 to i32
    %c0_i32_43 = arith.constant 0 : i32
    %31 = arith.cmpi ne, %30, %c0_i32_43 : i32
    scf.if %31 {
      %cst_51 = arith.constant 0.000000e+00 : f32
      %40 = vector.broadcast %cst_51 : f32 to vector<1x128xf32>
      %c0_52 = arith.constant 0 : index
      %c0_53 = arith.constant 0 : index
      %41 = vector.load %arg13[%c0_52, %c0_53] : memref<1x128xf32, #tpu.memory_space<vmem>>, vector<1x128xf32>
      tpu.vector_store %arg13[%c0_52, %c0_53], %40 {strides = array<i32>} : memref<1x128xf32, #tpu.memory_space<vmem>>, vector<1x128xf32>,
    } else {
    }
    %c0_44 = arith.constant 0 : index
    %c0_45 = arith.constant 0 : index
    %32 = vector.load %arg13[%c0_44, %c0_45] : memref<1x128xf32, #tpu.memory_space<vmem>>, vector<1x128xf32>
    %cst_46 = arith.constant dense<0.000000e+00> : vector<128xf32>
    %33 = vector.multi_reduction <add>, %28, %cst_46 [0] : vector<128x128xf32> to vector<128xf32>
    %34 = vector.shape_cast %33 : vector<128xf32> to vector<1x128xf32>
    %35 = arith.addf %32, %34 : vector<1x128xf32>
    %c0_47 = arith.constant 0 : index
    %c0_48 = arith.constant 0 : index
    %36 = vector.load %arg13[%c0_47, %c0_48] : memref<1x128xf32, #tpu.memory_space<vmem>>, vector<1x128xf32>
    tpu.vector_store %arg13[%c0_47, %c0_48], %35 {strides = array<i32>} : memref<1x128xf32, #tpu.memory_space<vmem>>, vector<1x128xf32>,
    %c1_i32_49 = arith.constant 1 : i32
    %37 = arith.cmpi eq, %arg1, %c1_i32_49 : i32
    %38 = arith.extui %37 : i1 to i32
    %c0_i32_50 = arith.constant 0 : i32
    %39 = arith.cmpi ne, %38, %c0_i32_50 : i32
    scf.if %39 {
      %c0_51 = arith.constant 0 : index
      %c0_52 = arith.constant 0 : index
      %40 = vector.load %arg13[%c0_51, %c0_52] : memref<1x128xf32, #tpu.memory_space<vmem>>, vector<1x128xf32>
      %cst_53 = arith.constant 3.906250e-03 : f32
      %41 = vector.broadcast %cst_53 : f32 to vector<1x128xf32>
      %42 = arith.mulf %40, %41 : vector<1x128xf32>
      %c0_54 = arith.constant 0 : index
      %c0_55 = arith.constant 0 : index
      %43 = vector.load %arg7[%c0_54, %c0_55] : memref<128x128xf32, #tpu.memory_space<vmem>>, vector<128x128xf32>
      %cst_56 = arith.constant dense<0.000000e+00> : vector<1x128xf32>
      %44 = tpu.matmul %42, %43, %cst_56 {dimension_numbers = #tpu.dot_dimension_numbers<[1], [0], [0], [1], [0, 0, 1, 1], [], []>} : vector<1x128xf32>, vector<128x128xf32>, vector<1x128xf32> -> vector<1x128xf32>
      %c0_57 = arith.constant 0 : index
      %c0_58 = arith.constant 0 : index
      %45 = vector.load %arg8[%c0_57, %c0_58] : memref<1x128xf32, #tpu.memory_space<vmem>>, vector<1x128xf32>
      %46 = arith.addf %44, %45 : vector<1x128xf32>
      %c0_59 = arith.constant 0 : index
      %c0_60 = arith.constant 0 : index
      %47 = vector.load %arg9[%c0_59, %c0_60] : memref<128x128xf32, #tpu.memory_space<vmem>>, vector<128x128xf32>
      %cst_61 = arith.constant dense<0.000000e+00> : vector<1x128xf32>
      %48 = tpu.matmul %46, %47, %cst_61 {dimension_numbers = #tpu.dot_dimension_numbers<[1], [0], [0], [1], [0, 0, 1, 1], [], []>} : vector<1x128xf32>, vector<128x128xf32>, vector<1x128xf32> -> vector<1x128xf32>
      %c0_62 = arith.constant 0 : index
      %c0_63 = arith.constant 0 : index
      %49 = vector.load %arg10[%c0_62, %c0_63] : memref<1x128xf32, #tpu.memory_space<vmem>>, vector<1x128xf32>
      %50 = arith.addf %48, %49 : vector<1x128xf32>
      %c0_64 = arith.constant 0 : index
      %c0_65 = arith.constant 0 : index
      %c0_66 = arith.constant 0 : index
      %51 = vector.load %arg11[%c0_64, %c0_65, %c0_66] : memref<1x1x128xf32, #tpu.memory_space<vmem>>, vector<1x1x128xf32>
      %52 = vector.shape_cast %51 : vector<1x1x128xf32> to vector<1x128xf32>
      %53 = vector.shape_cast %50 : vector<1x128xf32> to vector<1x1x128xf32>
      tpu.vector_store %arg11[%c0_64, %c0_65, %c0_66], %53 {strides = array<i32>} : memref<1x1x128xf32, #tpu.memory_space<vmem>>, vector<1x1x128xf32>,
    } else {
    }
    return
  }
  func.func @transform_0(%arg0: i32, %arg1: i32) -> (i32, i32, i32, i32) {
    %c0_i32 = arith.constant 0 : i32
    %c0_i32_0 = arith.constant 0 : i32
    %c0_i32_1 = arith.constant 0 : i32
    return %arg0, %arg1, %c0_i32, %c0_i32_0 : i32, i32, i32, i32
  }
  func.func @transform_1(%arg0: i32, %arg1: i32) -> (i32, i32, i32, i32) {
    %c8_i32 = arith.constant 8 : i32
    %0 = arith.muli %arg1, %c8_i32 : i32
    %c1_i32 = arith.constant 1 : i32
    %1 = arith.subi %0, %c1_i32 : i32
    %c0_i32 = arith.constant 0 : i32
    %2 = arith.maxsi %1, %c0_i32 : i32
    %c0_i32_0 = arith.constant 0 : i32
    %c0_i32_1 = arith.constant 0 : i32
    %c0_i32_2 = arith.constant 0 : i32
    return %arg0, %2, %c0_i32_0, %c0_i32_1 : i32, i32, i32, i32
  }
  func.func @transform_2(%arg0: i32, %arg1: i32) -> (i32, i32, i32, i32) {
    %c8_i32 = arith.constant 8 : i32
    %0 = arith.muli %arg1, %c8_i32 : i32
    %c8_i32_0 = arith.constant 8 : i32
    %1 = arith.addi %0, %c8_i32_0 : i32
    %c15_i32 = arith.constant 15 : i32
    %2 = arith.minsi %1, %c15_i32 : i32
    %c0_i32 = arith.constant 0 : i32
    %c0_i32_1 = arith.constant 0 : i32
    %c0_i32_2 = arith.constant 0 : i32
    return %arg0, %2, %c0_i32, %c0_i32_1 : i32, i32, i32, i32
  }
  func.func @transform_3(%arg0: i32, %arg1: i32) -> (i32, i32) {
    %c0_i32 = arith.constant 0 : i32
    %c0_i32_0 = arith.constant 0 : i32
    %c0_i32_1 = arith.constant 0 : i32
    return %c0_i32, %c0_i32_0 : i32, i32
  }
  func.func @transform_4(%arg0: i32, %arg1: i32) -> (i32, i32) {
    %c0_i32 = arith.constant 0 : i32
    %c0_i32_0 = arith.constant 0 : i32
    %c0_i32_1 = arith.constant 0 : i32
    return %c0_i32, %c0_i32_0 : i32, i32
  }
  func.func @transform_5(%arg0: i32, %arg1: i32) -> (i32, i32) {
    %c0_i32 = arith.constant 0 : i32
    %c0_i32_0 = arith.constant 0 : i32
    %c0_i32_1 = arith.constant 0 : i32
    return %c0_i32, %c0_i32_0 : i32, i32
  }
  func.func @transform_6(%arg0: i32, %arg1: i32) -> (i32, i32) {
    %c0_i32 = arith.constant 0 : i32
    %c0_i32_0 = arith.constant 0 : i32
    %c0_i32_1 = arith.constant 0 : i32
    return %c0_i32, %c0_i32_0 : i32, i32
  }
  func.func @transform_7(%arg0: i32, %arg1: i32) -> (i32, i32) {
    %c0_i32 = arith.constant 0 : i32
    %c0_i32_0 = arith.constant 0 : i32
    %c0_i32_1 = arith.constant 0 : i32
    return %c0_i32, %c0_i32_0 : i32, i32
  }
  func.func @transform_8(%arg0: i32, %arg1: i32) -> (i32, i32) {
    %c0_i32 = arith.constant 0 : i32
    %c0_i32_0 = arith.constant 0 : i32
    %c0_i32_1 = arith.constant 0 : i32
    return %c0_i32, %c0_i32_0 : i32, i32
  }
  func.func @transform_9(%arg0: i32, %arg1: i32) -> (i32, i32, i32) {
    %c0_i32 = arith.constant 0 : i32
    %c0_i32_0 = arith.constant 0 : i32
    %c0_i32_1 = arith.constant 0 : i32
    return %arg0, %c0_i32, %c0_i32_0 : i32, i32, i32
  }
}

</mosaic_0001>

<bundles_post_ra>
// kernel: tpu_custom_call.1
= control target key start
LH: loop header
LB: loop body
LE: loop exit
PB: predicated region body
PF: predicated region fallthrough
CT: control target
= control target key end

     0   :  { %s3404_s0 = inlined_call_operand.vmem [shape: bf16[2,16,16,3], index: 0, kind: input, shape index: {}]   ;;  %s3405_s1 = inlined_call_operand.vmem [shape: bf16[2,16,16,3], index: 1, kind: input, shape index: {}]   ;;  %s3406_s2 = inlined_call_operand.vmem [shape: bf16[2,16,16,3], index: 2, kind: input, shape index: {}]   ;;  %s3407_s3 = inlined_call_operand.vmem [shape: bf16[27,128], index: 3, kind: input, shape index: {}]   ;;  %s3408_s4 = inlined_call_operand.vmem [shape: f32[1,128], index: 4, kind: input, shape index: {}]   ;;  %s3409_s5 = inlined_call_operand.vmem [shape: f32[128,128], index: 5, kind: input, shape index: {}]   ;;  %s3410_s6 = inlined_call_operand.vmem [shape: f32[1,128], index: 6, kind: input, shape index: {}]   ;;  %s3411_s7 = inlined_call_operand.vmem [shape: f32[128,128], index: 7, kind: input, shape index: {}]   ;;  %s3412_s8 = inlined_call_operand.vmem [shape: f32[1,128], index: 8, kind: input, shape index: {}]   ;;  %s3413_s9 = inlined_call_operand.hbm [shape: f32[2,1,128], index: 9, kind: output, shape index: {}]  }
   0x1   :  { %3418 = sst [smem:[#allocation10_spill]] %s3404_s0 }
   0x2   :  { %14 = vsyncpa [#allocation5], 0 }
   0x3   :  { %16 = vsyncpa [#allocation5 + $0x1], 0  ;;  %s2595_s30 = smov 0   ;;  %s2597_s10 = smov 0  }
   0x4   :  { %s2599_s11 = smov 0   ;;  %s2601_s12 = smov 0  }
   0x5   :  { %s2603_s13 = smov 0   ;;  %s2605_s14 = smov 0  }
   0x6   :  { %s2607_s15 = smov 0   ;;  %s2609_s16 = smov 0  }
   0x7 LB: > { %3419 = sst [smem:[#allocation7_spill]] %s2528_s15  ;;  %s2161_s17 = sadd.s32 4294967295, %s2532_s16   ;;  %s2532_s16 = sphi %s2609_s16, %s22_s16   ;;  %s2528_s15 = sphi %s2607_s15, %s3437_s15   ;;  %s2524_s14 = sphi %s2605_s14, %s3442_s14   ;;  %s2520_s13 = sphi %s2603_s13, %s3435_s13   ;;  %s2516_s12 = sphi %s2601_s12, %s3441_s12   ;;  %s2512_s11 = sphi %s2599_s11, %s3440_s11   ;;  %s2508_s10 = sphi %s2597_s10, %s3439_s10   ;;  %s2504_s30 = sphi %s2595_s30, %s3438_s30  }
   0x8   : > { %s2162_s18 = sadd.s32 4294967294, %s2532_s16   ;;  %s31_s19 = sadd.s32 1, %s2524_s14 }
   0x9   : > { %p32_p0 = scmp.ge.s32.totalorder %s31_s19, 2  ;;  %s34_s20 = sadd.s32 1, %s2528_s15 }
   0xa   : > { %p277_p1 = scmp.ne.s32.totalorder %s2512_s11, %s2508_s10  ;;  %p278_p2 = scmp.eq.s32.totalorder %s2161_s17, 3 }
   0xb   : > { %s3444_s19 = smov (%p32_p0, %s31_s19), 0  ;;  %s3446_s20 = smov (!%p32_p0, %s34_s20), %s2528_s15 }
   0xc   : > { %3420 = sst [smem:[#allocation8_spill]] %s3444_s19  ;;  %p2644_p3 = por %p278_p2, %p277_p1 }
   0xd   : > { %p283_p4 = scmp.ne.s32.totalorder %s2508_s10, %s2504_s30  ;;  %p36_p5 = scmp.ge.s32.totalorder %s3446_s20, 2 }
   0xe   : > { %p284_p6 = scmp.eq.s32.totalorder %s2162_s18, 3  ;;  %p2171_p7 = scmp.ge.s32.totalorder %s2532_s16, 1 }
   0xf   : > { %p374_p8 = scmp.lt.s32.totalorder %s2532_s16, 5  ;;  %s3448_s20 = smov (%p36_p5, %s3446_s20), 0 }
  0x10   : > { %3422 = sst [smem:[#allocation9_spill]] %s3448_s20  ;;  %p2654_p9 = por %p284_p6, %p283_p4 }
  0x11   : > { %p375_p10 = pnand %p2171_p7, %p374_p8  ;;  %s264_s23 = ssub.s32 %s2528_s15, %s3448_s20 }
  0x12   : > { %s267_s24 = sadd.s32 1, %s2512_s11  ;;  %p265_p11 = scmp.eq.s32.totalorder %s264_s23, 0 }
  0x13   : > { %378 = sbr.rel (%p375_p10) target bundleno = 889 (0x379), region = 56  ;;  %s2172_s27 = sshll.u32 (!%p375_p10), %s2516_s12, 3 }
  0x14   : > { %s2662_s25 = scalar_select %p265_p11, %s2512_s11, %s267_s24  }
  0x15   : > { %p441_p12 = scmp.lt.s32.totalorder (!%p375_p10), %s2520_s13, 1  ;;  %p443_p13 = scmp.lt.s32.totalorder (!%p375_p10), %s2172_s27, 15 }
  0x16   : > { %s2177_s28 = sadd.s32 (!%p375_p10), 4294967295, %s2172_s27  ;;  %s469_s26 = sadd.s32 (!%p375_p10), 8, %s2172_s27 }
  0x17   : > { %p453_p0 = scmp.gt.s32.totalorder (!%p375_p10), %s2177_s28, 0  ;;  %p2178_p1 = scmp.lt.s32.totalorder (!%p375_p10), %s2177_s28, 15 }
  0x18   : > { %vm486_vm0 = vcmask 19456   ;;  %v2534_v0 = vmov 0   ;;  %s442_s29 = scalar_select %p441_p12, %s2520_s13, 1  ;;  %vm489_vm1 = vcmask 16384   ;;  %vm699_vm2 = vsmask.f32 7938 }
  0x19   : > { %491 = vst.msk [vmem:[#allocation2 + $0xc] sm:$0xf] %vm486_vm0, %v2534_v0  ;;  %s444_s17 = scalar_select %p443_p13, %s2172_s27, 15  ;;  %vm534_vm3 = vsmask.f32 256  ;;  %vm2756_vm5 = vmand %vm486_vm0, %vm699_vm2 }
  0x1a   : > { %487 = vst.msk [vmem:[#allocation2] sm:$0xf] %vm486_vm0, %v2534_v0  ;;  %s2678_s18 = sshll.u32 %s442_s29, 5  ;;  %p2687_p2 = scmp.lt.s32.totalorder %s469_s26, 15  ;;  %vm535_vm4 = vsmask.f32 4368  ;;  %vm2773_vm7 = vmand %vm489_vm1, %vm534_vm3 }
  0x1b   : > { %488 = vst.msk [vmem:[#allocation2 + $0x4] sm:$0xf] %vm486_vm0, %v2534_v0  ;;  %s2173_s23 = sshll.u32 %s444_s17, 1  ;;  %s3425_s0 = sld [smem:[#allocation10_spill]]  ;;  %vm2764_vm6 = vmor %vm534_vm3, %vm535_vm4 }
  0x1c   : > { %492 = vst.msk [vmem:[#allocation2 + $0x10] sm:$0xf] %vm486_vm0, %v2534_v0  ;;  %s447_s24 = sadd.s32 %s2678_s18, %s2173_s23  ;;  %s3450_s26 = smov (!%p2687_p2, %s469_s26), 15 }
  0x1d   : > { %494 = vst.msk [vmem:[#allocation2 + $0x18] sm:$0xf] %vm486_vm0, %v2534_v0  ;;  %s2175_s20 = sshll.u32 %s447_s24, 2  ;;  %s3454_s26 = smov (!%p2687_p2, %s3450_s26), 15 }
  0x1e   : > { %495 = vst.msk [vmem:[#allocation2 + $0x1c] sm:$0xf] %vm486_vm0, %v2534_v0  ;;  %s454_s27 = scalar_select %p453_p0, %s2177_s28, 0 }
  0x1f   : > { %497 = vst.msk [vmem:[#allocation2 + $0x24] sm:$0xf] %vm486_vm0, %v2534_v0  ;;  %s2190_s28 = sshll.u32 %s3454_s26, 1  ;;  %p2193_p4 = scmp.le.s32.totalorder %s2516_s12, 0 }
  0x20   : > { %498 = vst.msk [vmem:[#allocation2 + $0x28] sm:$0xf] %vm486_vm0, %v2534_v0  ;;  %s3452_s27 = smov (!%p2178_p1, %s454_s27), 15  ;;  %s478_s24 = sadd.s32 %s2190_s28, %s2678_s18  ;;  %v701_v19 = vld [vmem:[#allocation2 + $0xc] sm:$0xf] }
  0x21   : > { %500 = vst.msk [vmem:[#allocation2 + $0x30] sm:$0xf] %vm486_vm0, %v2534_v0  ;;  %s2696_s15 = scalar_lea.vmem %s3425_s0, %s2175_s20  ;;  %s2183_s20 = sshll.u32 %s3452_s27, 1 }
  0x22   : > { %501 = vst.msk [vmem:[#allocation2 + $0x34] sm:$0xf] %vm486_vm0, %v2534_v0  ;;  %v518_v1 = vld [vmem:[%s2696_s15] sm:$0xf]  ;;  %v519_v2 = vld [vmem:[%s2696_s15 + $0x4] sm:$0xf]  ;;  %s461_s23 = sadd.s32 %s2183_s20, %s2678_s18 }
  0x23   : > { %503 = vst.msk [vmem:[#allocation2 + $0x3c] sm:$0xf] %vm486_vm0, %v2534_v0  ;;  %v520_v3 = vld [vmem:[%s2696_s15 + $0x8] sm:$0xf]  ;;  %v538_v4 = vshrl.u32 %v518_v1, 16  ;;  %s2185_s19 = sshll.u32 %s461_s23, 2 }
  0x24   : > { %504 = vst.msk [vmem:[#allocation2 + $0x40] sm:$0xf] %vm486_vm0, %v2534_v0  ;;  %v546_v5 = vshrl.u32 %v519_v2, 16  ;;  %s2727_s27 = scalar_lea.vmem %s3405_s1, %s2185_s19  ;;  %s2192_s0 = sshll.u32 %s478_s24, 2  ;;  %v555_v6 = vshrl.u32 %v520_v3, 16  ;;  %v541_v10 = vshll.u32 %v518_v1, 16 }
  0x25   : > { %506 = vst.msk [vmem:[#allocation2 + $0x48] sm:$0xf] %vm486_vm0, %v2534_v0  ;;  %s2734_s18 = scalar_lea.vmem %s3406_s2, %s2192_s0  ;;  %v521_v7 = vld [vmem:[%s2696_s15 + $0xc] sm:$0xf]  ;;  %v522_v8 = vld [vmem:[%s2696_s15 + $0x10] sm:$0xf] }
  0x26   : > { %507 = vst.msk [vmem:[#allocation2 + $0x4c] sm:$0xf] %vm486_vm0, %v2534_v0  ;;  %v540_v9 = vrot.slane %v538_v4, 7  ;;  %v548_v11 = vrot.slane %v546_v5, 7  ;;  %v549_v12 = vshll.u32 %v519_v2, 16  ;;  %v563_v13 = vshrl.u32 %v521_v7, 16 }
  0x27   : > { %509 = vst.msk [vmem:[#allocation2 + $0x54] sm:$0xf] %vm486_vm0, %v2534_v0  ;;  %v557_v14 = vrot.slane %v555_v6, 7  ;;  %v572_v15 = vshrl.u32 %v522_v8, 16  ;;  %v523_v16 = vld [vmem:[%s2696_s15 + $0x14] sm:$0xf] }
  0x28   : > { %510 = vst.msk [vmem:[#allocation2 + $0x58] sm:$0xf] %vm486_vm0, %v2534_v0  ;;  %v580_v17 = vshrl.u32 %v523_v16, 16  ;;  %v543_v18 = vor.u32 %v541_v10, %v540_v9  ;;  %v544_v20 = vrot.slane %v540_v9, 4  ;;  %v558_v21 = vshll.u32 %v520_v3, 16  ;;  %s3432_s0 = sand.u32 1, %s2508_s10  }
  0x29   : > { %512 = vst.msk [vmem:[#allocation2 + $0x60] sm:$0xf] %vm486_vm0, %v2534_v0  ;;  %v524_v22 = vld [vmem:[%s2696_s15 + $0x18] sm:$0xf]  ;;  %v551_v23 = vor.u32 %v549_v12, %v548_v11  ;;  %v565_v24 = vrot.slane %v563_v13, 7  ;;  %v566_v25 = vshll.u32 %v521_v7, 16 }
  0x2a   : > { %513 = vst.msk [vmem:[#allocation2 + $0x64] sm:$0xf] %vm486_vm0, %v2534_v0  ;;  %v589_v26 = vshrl.u32 %v524_v22, 16  ;;  %v553_v28 = vrot.slane %v548_v11, 4  ;;  %v561_v29 = vrot.slane %v557_v14, 4  ;;  %v574_v30 = vrot.slane %v572_v15, 7 }
  0x2b   : > { %515 = vst.msk [vmem:[#allocation2 + $0x6c] sm:$0xf] %vm486_vm0, %v2534_v0  ;;  %v575_v31 = vshll.u32 %v522_v8, 16  ;;  %v710_v33 = vld [vmem:[#allocation2 + $0x18] sm:$0xf]  ;;  %v582_v34 = vrot.slane %v580_v17, 7  ;;  %v560_v38 = vor.u32 %v558_v21, %v557_v14  ;;  %v702_v42 = vsel %vm2756_vm5, %v543_v18, %v701_v19 }
  0x2c   : > { %516 = vst.msk [vmem:[#allocation2 + $0x70] sm:$0xf] %vm486_vm0, %v2534_v0  ;;  %v583_v35 = vshll.u32 %v523_v16, 16  ;;  %v525_v36 = vld [vmem:[%s2696_s15 + $0x1c] sm:$0xf]  ;;  %v592_v39 = vshll.u32 %v524_v22, 16  ;;  %v568_v44 = vor.u32 %v566_v25, %v565_v24  ;;  %v552_v47 = vsel %vm2764_vm6, %v544_v20, %v551_v23 }
  0x2d   : > { %493 = vst.msk [vmem:[#allocation2 + $0x14] sm:$0x1] %vm489_vm1, %v2534_v0  ;;  %v597_v40 = vshrl.u32 %v525_v36, 16  ;;  %v526_v41 = vld [vmem:[%s2696_s15 + $0x20] sm:$0xf]  ;;  %v591_v45 = vrot.slane %v589_v26, 7  ;;  %v577_v49 = vor.u32 %v575_v31, %v574_v30  ;;  %v711_v57 = vsel %vm2756_vm5, %v560_v38, %v710_v33 }
  0x2e   : > { %490 = vst.msk [vmem:[#allocation2 + $0x8] sm:$0x1] %vm489_vm1, %v2534_v0  ;;  %v606_v46 = vshrl.u32 %v526_v41, 16  ;;  %v570_v48 = vrot.slane %v565_v24, 4  ;;  %v717_v50 = vld [vmem:[#allocation2 + $0x24] sm:$0xf]  ;;  %v585_v54 = vor.u32 %v583_v35, %v582_v34  ;;  %v569_v61 = vsel %vm2764_vm6, %v561_v29, %v568_v44 }
  0x2f   : > { %496 = vst.msk [vmem:[#allocation2 + $0x20] sm:$0x1] %vm489_vm1, %v2534_v0  ;;  %v578_v51 = vrot.slane %v574_v30, 4  ;;  %v599_v55 = vrot.slane %v597_v40, 7  ;;  %v600_v56 = vshll.u32 %v525_v36, 16  ;;  %v609_v60 = vshll.u32 %v526_v41, 16 }
  0x30   : > { %499 = vst.msk [vmem:[#allocation2 + $0x2c] sm:$0x1] %vm489_vm1, %v2534_v0  ;;  %v724_v58 = vld [vmem:[#allocation2 + $0x30] sm:$0xf]  ;;  %v608_v59 = vrot.slane %v606_v46, 7  ;;  %v587_v62 = vrot.slane %v582_v34, 4  ;;  %v594_v63 = vor.u32 %v592_v39, %v591_v45  ;;  %v718_v2 = vsel %vm2756_vm5, %v577_v49, %v717_v50 }
  0x31   : > { %502 = vst.msk [vmem:[#allocation2 + $0x38] sm:$0x1] %vm489_vm1, %v2534_v0  ;;  %v595_v4 = vrot.slane %v591_v45, 4  ;;  %v586_v6 = vsel %vm2764_vm6, %v578_v51, %v585_v54  ;;  %v602_v7 = vor.u32 %v600_v56, %v599_v55  ;;  %v604_v8 = vrot.slane %v599_v55, 4  ;;  %v731_v10 = vld [vmem:[#allocation2 + $0x3c] sm:$0xf] }
  0x32   : > { %505 = vst.msk [vmem:[#allocation2 + $0x44] sm:$0x1] %vm489_vm1, %v2534_v0  ;;  %v528_v12 = vld [vmem:[%s2696_s15 + $0x28] sm:$0xf]  ;;  %v611_v13 = vor.u32 %v609_v60, %v608_v59  ;;  %v725_v18 = vsel %vm2756_vm5, %v594_v63, %v724_v58  ;;  %v612_v19 = vrot.slane %v608_v59, 4 }
  0x33   : > { %508 = vst.msk [vmem:[#allocation2 + $0x50] sm:$0x1] %vm489_vm1, %v2534_v0  ;;  %v623_v15 = vshrl.u32 %v528_v12, 16  ;;  %v626_v16 = vshll.u32 %v528_v12, 16  ;;  %v529_v20 = vld [vmem:[%s2696_s15 + $0x2c] sm:$0xf]  ;;  %v603_v25 = vsel %vm2764_vm6, %v595_v4, %v602_v7 }
  0x34   : > { %511 = vst.msk [vmem:[#allocation2 + $0x5c] sm:$0x1] %vm489_vm1, %v2534_v0  ;;  %v707_v43 = vld [vmem:[#allocation2 + $0x14] sm:$0x1]  ;;  %v631_v24 = vshrl.u32 %v529_v20, 16  ;;  %v732_v30 = vsel %vm2756_vm5, %v611_v13, %v731_v10 }
  0x35   : > { %514 = vst.msk [vmem:[#allocation2 + $0x68] sm:$0x1] %vm489_vm1, %v2534_v0  ;;  %v708_v52 = vsel %vm2773_vm7, %v553_v28, %v707_v43  ;;  %v625_v23 = vrot.slane %v623_v15, 7  ;;  %v634_v28 = vshll.u32 %v529_v20, 16  ;;  %v738_v33 = vld [vmem:[#allocation2 + $0x48] sm:$0xf] }
  0x36   : > { %517 = vst.msk [vmem:[#allocation2 + $0x74] sm:$0x1] %vm489_vm1, %v2534_v0  ;;  %v714_v53 = vld [vmem:[#allocation2 + $0x20] sm:$0x1]  ;;  %v527_v0 = vld [vmem:[%s2696_s15 + $0x24] sm:$0xf] }
  0x37   : > { %703 = vst [vmem:[#allocation2 + $0xc] sm:$0xf] %v702_v42  ;;  %v715_v1 = vsel %vm2773_vm7, %v570_v48, %v714_v53  ;;  %v721_v3 = vld [vmem:[#allocation2 + $0x2c] sm:$0x1]  ;;  %v614_v5 = vshrl.u32 %v527_v0, 16  ;;  %v617_v11 = vshll.u32 %v527_v0, 16  ;;  %v628_v31 = vor.u32 %v626_v16, %v625_v23 }
  0x38   : > { %704 = vst.msk [vmem:[#allocation2 + $0x10] sm:$0xf] %vm486_vm0, %v552_v47  ;;  %v728_v9 = vld [vmem:[#allocation2 + $0x38] sm:$0x1]  ;;  %v722_v17 = vsel %vm2773_vm7, %v587_v62, %v721_v3  ;;  %v530_v34 = vld [vmem:[%s2696_s15 + $0x30] sm:$0xf] }
  0x39   : > { %709 = vst [vmem:[#allocation2 + $0x14] sm:$0x1] %v708_v52  ;;  %v616_v14 = vrot.slane %v614_v5, 7  ;;  %v735_v26 = vld [vmem:[#allocation2 + $0x44] sm:$0x1]  ;;  %v729_v29 = vsel %vm2773_vm7, %v604_v8, %v728_v9  ;;  %v629_v35 = vrot.slane %v625_v23, 4  ;;  %v739_v48 = vsel %vm2756_vm5, %v628_v31, %v738_v33 }
  0x3a   : > { %712 = vst [vmem:[#allocation2 + $0x18] sm:$0xf] %v711_v57  ;;  %v633_v36 = vrot.slane %v631_v24, 7  ;;  %v640_v38 = vshrl.u32 %v530_v34, 16  ;;  %v643_v39 = vshll.u32 %v530_v34, 16 }
  0x3b   : > { %713 = vst.msk [vmem:[#allocation2 + $0x1c] sm:$0xf] %vm486_vm0, %v569_v61  ;;  %v619_v21 = vor.u32 %v617_v11, %v616_v14  ;;  %v621_v22 = vrot.slane %v616_v14, 4  ;;  %v742_v42 = vld [vmem:[#allocation2 + $0x50] sm:$0x1] }
  0x3c   : > { %716 = vst [vmem:[#allocation2 + $0x20] sm:$0x1] %v715_v1  ;;  %v531_v43 = vld [vmem:[%s2696_s15 + $0x34] sm:$0xf]  ;;  %v636_v44 = vor.u32 %v634_v28, %v633_v36  ;;  %v638_v45 = vrot.slane %v633_v36, 4  ;;  %v642_v46 = vrot.slane %v640_v38, 7 }
  0x3d   : > { %719 = vst [vmem:[#allocation2 + $0x24] sm:$0xf] %v718_v2  ;;  %v620_v40 = vsel %vm2764_vm6, %v612_v19, %v619_v21  ;;  %v736_v41 = vsel %vm2773_vm7, %v621_v22, %v735_v26  ;;  %v648_v47 = vshrl.u32 %v531_v43, 16  ;;  %v745_v49 = vld [vmem:[#allocation2 + $0x54] sm:$0xf]  ;;  %v651_v50 = vshll.u32 %v531_v43, 16 }
  0x3e   : > { %720 = vst.msk [vmem:[#allocation2 + $0x28] sm:$0xf] %vm486_vm0, %v586_v6  ;;  %v637_v51 = vsel %vm2764_vm6, %v629_v35, %v636_v44  ;;  %v743_v52 = vsel %vm2773_vm7, %v638_v45, %v742_v42  ;;  %v645_v53 = vor.u32 %v643_v39, %v642_v46  ;;  %v532_v54 = vld [vmem:[%s2696_s15 + $0x38] sm:$0xf]  ;;  %v646_v55 = vrot.slane %v642_v46, 4 }
  0x3f   : > { %723 = vst [vmem:[#allocation2 + $0x2c] sm:$0x1] %v722_v17  ;;  %v650_v56 = vrot.slane %v648_v47, 7  ;;  %v657_v57 = vshrl.u32 %v532_v54, 16  ;;  %v660_v58 = vshll.u32 %v532_v54, 16 }
  0x40   : > { %726 = vst [vmem:[#allocation2 + $0x30] sm:$0xf] %v725_v18  ;;  %v746_v59 = vsel %vm2756_vm5, %v645_v53, %v745_v49  ;;  %v749_v60 = vld [vmem:[#allocation2 + $0x5c] sm:$0x1]  ;;  %v752_v2 = vld [vmem:[#allocation2 + $0x60] sm:$0xf] }
  0x41   : > { %727 = vst.msk [vmem:[#allocation2 + $0x34] sm:$0xf] %vm486_vm0, %v603_v25  ;;  %v533_v61 = vld [vmem:[%s2696_s15 + $0x3c] sm:$0xf]  ;;  %v653_v62 = vor.u32 %v651_v50, %v650_v56  ;;  %v655_v63 = vrot.slane %v650_v56, 4  ;;  %v659_v0 = vrot.slane %v657_v57, 7 }
  0x42   : > { %730 = vst [vmem:[#allocation2 + $0x38] sm:$0x1] %v729_v29  ;;  %v665_v1 = vshrl.u32 %v533_v61, 16  ;;  %v668_v3 = vshll.u32 %v533_v61, 16  ;;  %v756_v10 = vld [vmem:[#allocation2 + $0x68] sm:$0x1] }
  0x43   : > { %733 = vst [vmem:[#allocation2 + $0x3c] sm:$0xf] %v732_v30  ;;  %v654_v4 = vsel %vm2764_vm6, %v646_v55, %v653_v62  ;;  %v750_v5 = vsel %vm2773_vm7, %v655_v63, %v749_v60  ;;  %v662_v6 = vor.u32 %v660_v58, %v659_v0  ;;  %v663_v7 = vrot.slane %v659_v0, 4  ;;  %s2849_s15 = scalar_lea.vmem [#allocation4], %s3432_s0 }
  0x44   : > { %734 = vst.msk [vmem:[#allocation2 + $0x40] sm:$0xf] %vm486_vm0, %v620_v40  ;;  %v667_v8 = vrot.slane %v665_v1, 7 }
  0x45   : > { %737 = vst [vmem:[#allocation2 + $0x44] sm:$0x1] %v736_v41  ;;  %v753_v9 = vsel %vm2756_vm5, %v662_v6, %v752_v2 }
  0x46   : > { %740 = vst [vmem:[#allocation2 + $0x48] sm:$0xf] %v739_v48  ;;  %v670_v11 = vor.u32 %v668_v3, %v667_v8  ;;  %v672_v12 = vrot.slane %v667_v8, 4 }
  0x47   : > { %741 = vst.msk [vmem:[#allocation2 + $0x4c] sm:$0xf] %vm486_vm0, %v637_v51 }
  0x48   : > { %744 = vst [vmem:[#allocation2 + $0x50] sm:$0x1] %v743_v52  ;;  %v671_v13 = vsel %vm2764_vm6, %v663_v7, %v670_v11  ;;  %v757_v14 = vsel %vm2773_vm7, %v672_v12, %v756_v10 }
  0x49   : > { %747 = vst [vmem:[#allocation2 + $0x54] sm:$0xf] %v746_v59 }
  0x4a   : > { %748 = vst.msk [vmem:[#allocation2 + $0x58] sm:$0xf] %vm486_vm0, %v654_v4  ;;  %762 = sbr.rel (%p2193_p4) target bundleno = 90 (0x5a), region = 60 }
  0x4b   : > { %751 = vst [vmem:[#allocation2 + $0x5c] sm:$0x1] %v750_v5 }
  0x4c   : > { %754 = vst [vmem:[#allocation2 + $0x60] sm:$0xf] %v753_v9 }
  0x4d   : > { %755 = vst.msk [vmem:[#allocation2 + $0x64] sm:$0xf] %vm486_vm0, %v671_v13 }
  0x4e   : > { %758 = vst [vmem:[#allocation2 + $0x68] sm:$0x1] %v757_v14 }
  0x4f   : > { %v763_v15 = vld [vmem:[%s2727_s27] sm:$0xf]  ;;  %v764_v16 = vld [vmem:[%s2727_s27 + $0x4] sm:$0xf]  ;;  %v789_v24 = vld [vmem:[#allocation2 + $0x8] sm:$0x1] }
  0x50   : > { %v766_v17 = vshrl.u32 %v763_v15, 16  ;;  %v769_v18 = vshll.u32 %v763_v15, 16  ;;  %v774_v19 = vshrl.u32 %v764_v16, 16  ;;  %v777_v20 = vshll.u32 %v764_v16, 16  ;;  %v785_v23 = vld [vmem:[#allocation2] sm:$0xf] }
  0x52   : > { %v768_v21 = vrot.slane %v766_v17, 7  ;;  %v776_v22 = vrot.slane %v774_v19, 7 }
  0x54   : > { %v771_v25 = vor.u32 %v769_v18, %v768_v21  ;;  %v772_v26 = vrot.slane %v768_v21, 4  ;;  %v779_v28 = vor.u32 %v777_v20, %v776_v22  ;;  %v781_v29 = vrot.slane %v776_v22, 4 }
  0x56   : > { %v786_v30 = vsel %vm2756_vm5, %v771_v25, %v785_v23  ;;  %v780_v31 = vsel %vm2764_vm6, %v772_v26, %v779_v28  ;;  %v790_v33 = vsel %vm2773_vm7, %v781_v29, %v789_v24 }
  0x57   : > { %787 = vst [vmem:[#allocation2] sm:$0xf] %v786_v30 }
  0x58   : > { %788 = vst.msk [vmem:[#allocation2 + $0x4] sm:$0xf] %vm486_vm0, %v780_v31 }
  0x59   : > { %791 = vst [vmem:[#allocation2 + $0x8] sm:$0x1] %v790_v33 }
  0x5a PF: > { %p2194_p5 = scmp.ge.s32.totalorder %s2516_s12, 1 }
  0x5c   : > { %795 = sbr.rel (%p2194_p5) target bundleno = 108 (0x6c), region = 64 }
  0x61   : > { %v796_v34 = vld [vmem:[%s2734_s18] sm:$0xf]  ;;  %v797_v35 = vld [vmem:[%s2734_s18 + $0x4] sm:$0xf]  ;;  %v819_v43 = vld [vmem:[#allocation2 + $0x6c] sm:$0xf] }
  0x62   : > { %v799_v36 = vshrl.u32 %v796_v34, 16  ;;  %v802_v38 = vshll.u32 %v796_v34, 16  ;;  %v807_v39 = vshrl.u32 %v797_v35, 16  ;;  %v810_v40 = vshll.u32 %v797_v35, 16  ;;  %v823_v44 = vld [vmem:[#allocation2 + $0x74] sm:$0x1] }
  0x64   : > { %v801_v41 = vrot.slane %v799_v36, 7  ;;  %v809_v42 = vrot.slane %v807_v39, 7 }
  0x66   : > { %v804_v45 = vor.u32 %v802_v38, %v801_v41  ;;  %v805_v46 = vrot.slane %v801_v41, 4  ;;  %v812_v47 = vor.u32 %v810_v40, %v809_v42  ;;  %v814_v48 = vrot.slane %v809_v42, 4 }
  0x68   : > { %v820_v49 = vsel %vm2756_vm5, %v804_v45, %v819_v43  ;;  %v813_v50 = vsel %vm2764_vm6, %v805_v46, %v812_v47  ;;  %v824_v51 = vsel %vm2773_vm7, %v814_v48, %v823_v44 }
  0x69   : > { %821 = vst [vmem:[#allocation2 + $0x6c] sm:$0xf] %v820_v49 }
  0x6a   : > { %822 = vst.msk [vmem:[#allocation2 + $0x70] sm:$0xf] %vm486_vm0, %v813_v50 }
  0x6b   : > { %825 = vst [vmem:[#allocation2 + $0x74] sm:$0x1] %v824_v51 }
  0x6c PF: > { %v2283_v52 = vld [vmem:[#allocation2 + $0x30] sm:$0xf0]  ;;  %v846_v53 = vld [vmem:[#allocation2 + $0x38] sm:$0x1]  ;;  %v2284_v54 = vld [vmem:[#allocation2 + $0x30] sm:$0xe] }
  0x6d   : > { %v975_v55 = vunpack.c.l.b16 %v846_v53  ;;  %v2285_v56 = vor.u32 %v2284_v54, %v2283_v52  ;;  %v2871_v57 = vld [vmem:[#allocation2 + $0x30] sm:$0xff]   ;;  %v2286_v58 = vld [vmem:[#allocation2 + $0x48] sm:$0xf0]  ;;  %vm1124_vm8 = vcmask 1046528   ;;  %v2287_v61 = vld [vmem:[#allocation2 + $0x48] sm:$0xe] }
  0x6e   : > { %v1037_v27 = vshrl.u32 %v2871_v57, 16  ;;  %v1039_v32 = vshll.u32 %v2871_v57, 16  ;;  %v848_v59 = vld [vmem:[#allocation2 + $0x50] sm:$0x1]  ;;  %v2875_v63 = vld [vmem:[#allocation2 + $0x48] sm:$0xff]   ;;  %v870_v0 = vld [vmem:[#allocation2 + $0x54] sm:$0xff]   ;;  %v2288_v3 = vor.u32 %v2287_v61, %v2286_v58 }
  0x6f   : > { %v983_v37 = vpack.c.b16 %v975_v55, %v975_v55  ;;  %v1137_v60 = vrot.slane %v2285_v56, 1  ;;  %v977_v62 = vunpack.c.l.b16 %v848_v59  ;;  %v2877_v1 = vld [vmem:[#allocation2 + $0x54] sm:$0xf0]  ;;  %vm987_vm9 = vsmask.f32 7424  ;;  %v866_v9 = vld [vmem:[#allocation2 + $0x3c] sm:$0xff]  }
  0x70   : > { %v1041_v2 = vrot.slane %v1039_v32, 1  ;;  %v1063_v4 = vshll.u32 %v2875_v63, 16  ;;  %v880_v8 = vld [vmem:[#allocation2 + $0x5c] sm:$0x1]  ;;  %v2402_v10 = vld [vmem:[#allocation2 + $0x3c] sm:$0xf0] }
  0x71   : > { %v1138_v5 = vrot.slane %v983_v37, 1  ;;  %v1044_v6 = vshll.u32 %v983_v37, 16  ;;  %v985_v7 = vpack.c.b16 %v977_v62, %v977_v62  ;;  %v1143_v12 = vrot.slane %v2288_v3, 1  ;;  %v878_v18 = vld [vmem:[#allocation2 + $0x44] sm:$0x1]  ;;  %s2535_s23 = smov 6  }
  0x72   : > { %v2880_v11 = vor.u32 %v1041_v2, %v1037_v27  ;;  %v1061_v13 = vshrl.u32 %v2875_v63, 16  ;;  %v1065_v16 = vrot.slane %v1063_v4, 1  ;;  %v1235_v20 = vunpack.c.l.b16 %v880_v8  ;;  %s2536_s28 = smov 3   ;;  %s2537_s19 = smov 9   ;;  %v2403_v35 = vld [vmem:[#allocation2 + $0x3c] sm:$0xe] }
  0x73   : > { %v1139_v14 = vsel %vm1124_vm8, %v1137_v60, %v1138_v5  ;;  %v1046_v15 = vrot.slane %v1044_v6, 1  ;;  %v1068_v17 = vshll.u32 %v985_v7, 16  ;;  %v1144_v19 = vrot.slane %v985_v7, 1  ;;  %1213 = vrot.lane.b32.xlu2 %v866_v9, %s2537_s19  ;;  %v2406_v41 = vld [vmem:[#allocation2 + $0x54] sm:$0xe]  ;;  %v2899_v52 = vld [vmem:[#allocation2 + $0x18] sm:$0xff]  }
  0x74   : > { %1157 = vrot.lane.b32.xlu1 %v1139_v14, %s2535_s23  ;;  %v1243_v22 = vpack.c.b16 %v1235_v20, %v1235_v20  ;;  %v1320_v23 = vshll.u32 %v870_v0, 16  ;;  %v1233_v24 = vunpack.c.l.b16 %v878_v18  ;;  %v2888_v25 = vor.u32 %v1065_v16, %v1061_v13  ;;  %v844_v44 = vld [vmem:[#allocation2 + $0x20] sm:$0x1]  ;;  %v842_v48 = vld [vmem:[#allocation2 + $0x8] sm:$0x1]  ;;  %s2538_s24 = smov 12  }
  0x75   : > { %v1047_v21 = vsel %vm987_vm9, %v2880_v11, %v1046_v15  ;;  %v1070_v26 = vrot.slane %v1068_v17, 1  ;;  %v1145_v28 = vsel %vm1124_vm8, %v1143_v12, %v1144_v19  ;;  %v1318_v30 = vshrl.u32 %v870_v0, 16  ;;  %v911_v27 = vld [vmem:[#allocation2 + $0x50] sm:$0x1]  ;;  %v2903_v32 = vld [vmem:[#allocation2] sm:$0xff]   ;;  %s2539_s29 = smov 15  }
  0x76   : > { %1092 = vrot.lane.b32.xlu0 %v1047_v21, %s2536_s28  ;;  %v1241_v29 = vpack.c.b16 %v1233_v24, %v1233_v24  ;;  %v1322_v31 = vrot.slane %v1320_v23, 1  ;;  %v1325_v33 = vshll.u32 %v1243_v22, 16  ;;  %v1296_v34 = vshll.u32 %v866_v9, 16  ;;  %v913_v2 = vld [vmem:[#allocation2 + $0x68] sm:$0x1]  ;;  %s3416_s17 = smov 18  }
  0x77   : > { %v1071_v36 = vsel %vm987_vm9, %v2888_v25, %v1070_v26  ;;  %v1294_v38 = vshrl.u32 %v866_v9, 16  ;;  %v2404_v45 = vor.u32 %v2403_v35, %v2402_v10  ;;  %v973_v50 = vunpack.c.l.b16 %v844_v44  ;;  %v2920_v13 = vld [vmem:[#allocation2 + $0x60] sm:$0xff]   ;;  %v2280_v35 = vld [vmem:[#allocation2 + $0x18] sm:$0xf0]  ;;  %s2541_s27 = smov 21   ;;  %s2542_s26 = smov 24  }
  0x78   : > { %v1298_v39 = vrot.slane %v1296_v34, 1  ;;  %v1301_v40 = vshll.u32 %v1241_v29, 16  ;;  %v1323_v42 = vor.u32 %v1322_v31, %v1318_v30  ;;  %v1327_v43 = vrot.slane %v1325_v33, 1  ;;  %v2277_v16 = vld [vmem:[#allocation2] sm:$0xf0]  ;;  %p2211_p6 = scmp.ne.s32.totalorder %s2516_s12, 0 }
  0x79   : > { %v2407_v51 = vor.u32 %v2406_v41, %v2877_v1  ;;  %v1393_v53 = vrot.slane %v2404_v45, 1  ;;  %v1394_v54 = vrot.slane %v1241_v29, 1  ;;  %v971_v56 = vunpack.c.l.b16 %v842_v48  ;;  %v2278_v17 = vld [vmem:[#allocation2] sm:$0xe]  ;;  %v2932_v29 = vld [vmem:[#allocation2 + $0xc] sm:$0xff]  }
  0x7a   : > { %v1299_v46 = vor.u32 %v1298_v39, %v1294_v38  ;;  %v1303_v47 = vrot.slane %v1301_v40, 1  ;;  %v1328_v49 = vsel %vm987_vm9, %v1323_v42, %v1327_v43  ;;  %v2905_v58 = vpack.c.b16 %v973_v50, %v973_v50  ;;  %v2934_v30 = vld [vmem:[#allocation2 + $0xc] sm:$0xf0]  ;;  %v2310_v40 = vld [vmem:[#allocation2 + $0x60] sm:$0xf0] }
  0x7b   : > { %1217 = vrot.lane.b32.xlu2 %v870_v0, %s2537_s19  ;;  %v1015_v59 = vshll.u32 %v2899_v52, 16  ;;  %v1399_v37 = vrot.slane %v2407_v51, 1  ;;  %v1400_v60 = vrot.slane %v1243_v22, 1  ;;  %v1395_v61 = vsel %vm1124_vm8, %v1393_v53, %v1394_v54  ;;  %v2311_v41 = vld [vmem:[#allocation2 + $0x60] sm:$0xe]  ;;  %v862_v53 = vld [vmem:[#allocation2 + $0x24] sm:$0xff]  }
  0x7c   : > { %1161 = vrot.lane.b32.xlu1 %v1145_v28, %s2535_s23  ;;  %v1304_v55 = vsel %vm987_vm9, %v1299_v46, %v1303_v47  ;;  %v1489_v62 = vunpack.c.l.b16 %v911_v27  ;;  %v979_v0 = vpack.c.b16 %v971_v56, %v971_v56  ;;  %v991_v1 = vshll.u32 %v2903_v32, 16  ;;  %v874_v43 = vld [vmem:[#allocation2 + $0x14] sm:$0x1]  ;;  %v2307_v47 = vld [vmem:[#allocation2 + $0x48] sm:$0xf0] }
  0x7d   : > { %v1013_v3 = vshrl.u32 %v2899_v52, 16  ;;  %v1017_v4 = vrot.slane %v1015_v59, 1  ;;  %v1020_v5 = vshll.u32 %v2905_v58, 16  ;;  %v1401_v6 = vsel %vm1124_vm8, %v1399_v37, %v1400_v60  ;;  %v2308_v48 = vld [vmem:[#allocation2 + $0x48] sm:$0xe] }
  0x7e   : > { %1096 = vrot.lane.b32.xlu0 %v1071_v36, %s2536_s28  ;;  %v2915_v7 = vpack.c.b16 %v1489_v62, %v1489_v62  ;;  %v989_v8 = vshrl.u32 %v2903_v32, 16  ;;  %v993_v9 = vrot.slane %v991_v1, 1  ;;  %v996_v10 = vshll.u32 %v979_v0, 16  ;;  %v2281_v36 = vld [vmem:[#allocation2 + $0x18] sm:$0xe] }
  0x7f   : > { %v1491_v12 = vunpack.c.l.b16 %v913_v2  ;;  %v2922_v14 = vor.u32 %v1017_v4, %v1013_v3  ;;  %v1022_v15 = vrot.slane %v1020_v5, 1  ;;  %v1576_v21 = vshll.u32 %v2920_v13, 16  ;;  %v2408_v54 = vld [vmem:[#allocation2 + $0x24] sm:$0xf0] }
  0x80   : > { %v1557_v18 = vshll.u32 %v2915_v7, 16  ;;  %v994_v19 = vor.u32 %v993_v9, %v989_v8  ;;  %v998_v20 = vrot.slane %v996_v10, 1  ;;  %v2279_v24 = vor.u32 %v2278_v17, %v2277_v16  ;;  %v2409_v10 = vld [vmem:[#allocation2 + $0x24] sm:$0xe]  ;;  %v2412_v16 = vld [vmem:[#allocation2 + $0xc] sm:$0xe] }
  0x81   : > { %v1499_v22 = vpack.c.b16 %v1491_v12, %v1491_v12  ;;  %v1023_v23 = vsel %vm987_vm9, %v2922_v14, %v1022_v15  ;;  %v1574_v26 = vshrl.u32 %v2920_v13, 16  ;;  %v1578_v33 = vrot.slane %v1576_v21, 1 }
  0x82   : > { %v1559_v28 = vrot.slane %v1557_v18, 1  ;;  %v999_v31 = vsel %vm987_vm9, %v994_v19, %v998_v20  ;;  %v1125_v38 = vrot.slane %v2279_v24, 1  ;;  %v1126_v39 = vrot.slane %v979_v0, 1  ;;  %v876_v0 = vld [vmem:[#allocation2 + $0x2c] sm:$0x1] }
  0x83   : > { %1413 = vrot.lane.b32.xlu2 %v1395_v61, %s2539_s29  ;;  %v1581_v34 = vshll.u32 %v1499_v22, 16  ;;  %v2282_v44 = vor.u32 %v2281_v36, %v2280_v35  ;;  %v2941_v45 = vor.u32 %v1578_v33, %v1574_v26  ;;  %v2312_v50 = vor.u32 %v2311_v41, %v2310_v40  ;;  %v907_v18 = vld [vmem:[#allocation2 + $0x20] sm:$0x1]  ;;  %v909_v36 = vld [vmem:[#allocation2 + $0x38] sm:$0x1] }
  0x84   : > { %1353 = vrot.lane.b32.xlu1 %v1328_v49, %s2538_s24  ;;  %v1560_v42 = vsel %vm987_vm9, %v2888_v25, %v1559_v28  ;;  %v1127_v49 = vsel %vm1124_vm8, %v1125_v38, %v1126_v39  ;;  %v1229_v51 = vunpack.c.l.b16 %v874_v43  ;;  %v1132_v56 = vrot.slane %v2905_v58, 1  ;;  %v2968_v43 = vld [vmem:[#allocation2 + $0x3c] sm:$0xff]  }
  0x85   : > { %v1583_v46 = vrot.slane %v1581_v34, 1  ;;  %v2309_v59 = vor.u32 %v2308_v48, %v2307_v47  ;;  %v1655_v37 = vrot.slane %v2312_v50, 1  ;;  %v1656_v60 = vrot.slane %v1499_v22, 1  ;;  %v2972_v47 = vld [vmem:[#allocation2 + $0x54] sm:$0xff]   ;;  %v847_v50 = vld [vmem:[#allocation2 + $0x44] sm:$0x1] }
  0x86   : > { %1349 = vrot.lane.b32.xlu0 %v1304_v55, %s2538_s24  ;;  %v1131_v55 = vrot.slane %v2282_v44, 1  ;;  %v1237_v61 = vpack.c.b16 %v1229_v51, %v1229_v51  ;;  %v1248_v62 = vshll.u32 %v2932_v29, 16  ;;  %v1650_v3 = vrot.slane %v2915_v7, 1  ;;  %v2417_v48 = vld [vmem:[#allocation2 + $0x54] sm:$0xf0] }
  0x87   : > { %v1584_v27 = vsel %vm987_vm9, %v2941_v45, %v1583_v46  ;;  %v1649_v2 = vrot.slane %v2309_v59, 1  ;;  %v1231_v58 = vunpack.c.l.b16 %v876_v0  ;;  %v1657_v4 = vsel %vm1124_vm8, %v1655_v37, %v1656_v60  ;;  %v2304_v51 = vld [vmem:[#allocation2 + $0x30] sm:$0xf0]  ;;  %v849_v59 = vld [vmem:[#allocation2 + $0x5c] sm:$0x1] }
  0x88   : > { %v1133_v1 = vsel %vm1124_vm8, %v1131_v55, %v1132_v56  ;;  %v1246_v5 = vshrl.u32 %v2932_v29, 16  ;;  %v1253_v8 = vshll.u32 %v1237_v61, 16  ;;  %v1272_v9 = vshll.u32 %v862_v53, 16  ;;  %v2301_v55 = vld [vmem:[#allocation2 + $0x18] sm:$0xf0] }
  0x89   : > { %v1651_v12 = vsel %vm1124_vm8, %v1649_v2, %v1650_v3  ;;  %v1239_v15 = vpack.c.b16 %v1231_v58, %v1231_v58  ;;  %v1270_v19 = vshrl.u32 %v862_v53, 16  ;;  %v1485_v24 = vunpack.c.l.b16 %v907_v18  ;;  %v2302_v56 = vld [vmem:[#allocation2 + $0x18] sm:$0xe] }
  0x8a   : > { %v1255_v7 = vrot.slane %v1253_v8, 1  ;;  %v1274_v20 = vrot.slane %v1272_v9, 1  ;;  %v1382_v40 = vrot.slane %v1237_v61, 1  ;;  %v1487_v41 = vunpack.c.l.b16 %v909_v36  ;;  %v2415_v61 = vld [vmem:[#allocation2 + $0x3c] sm:$0xe] }
  0x8b   : > { %1473 = vrot.lane.b32.xlu2 %v2920_v13, %s3416_s17  ;;  %v1277_v21 = vshll.u32 %v1239_v15, 16  ;;  %v1388_v34 = vrot.slane %v1239_v15, 1  ;;  %v1493_v35 = vpack.c.b16 %v1485_v24, %v1485_v24  ;;  %v1051_v0 = vshll.u32 %v2968_v43, 16 }
  0x8c   : > { %1469 = vrot.lane.b32.xlu1 %v2875_v63, %s3416_s17  ;;  %v1275_v26 = vor.u32 %v1274_v20, %v1270_v19  ;;  %v1495_v46 = vpack.c.b16 %v1487_v41, %v1487_v41  ;;  %v978_v2 = vunpack.c.l.b16 %v849_v59  ;;  %v3005_v59 = vld [vmem:[#allocation2 + $0x54] sm:$0xf0]  ;;  %vm1849_vm10 = vcmask 1044480  }
  0x8d   : > { %v1279_v28 = vrot.slane %v1277_v21, 1  ;;  %v1053_v8 = vrot.slane %v1051_v0, 1  ;;  %v843_v0 = vld [vmem:[#allocation2 + $0x14] sm:$0x1]  ;;  %vm1850_vm11 = vcmask 1045504   ;;  %vm1677_vm12 = vcmask 23552  }
  0x8e   : > { %1417 = vrot.lane.b32.xlu0 %v1401_v6, %s2539_s29  ;;  %v1250_v6 = vrot.slane %v1248_v62, 1  ;;  %v986_v15 = vpack.c.b16 %v978_v2, %v978_v2  ;;  %vm1694_vm13 = vcmask 48128   ;;  %vm1711_vm14 = vcmask 72704  }
  0x8f   : > { %v1280_v38 = vsel %vm987_vm9, %v1275_v26, %v1279_v28  ;;  %vm1728_vm15 = vcmask 97280   ;;  %vm1745_vm0 = vcmask 121856   ;;  %vm1762_vm1 = vcmask 146432  }
  0x90   : > { %v1251_v17 = vor.u32 %v1250_v6, %v1246_v5  ;;  %v1049_v6 = vshrl.u32 %v2968_v43, 16  ;;  %v1080_v24 = vshll.u32 %v986_v15, 16  ;;  %vm1796_vm2 = vcmask 195584  }
  0x91   : > { %vm1779_vm3 = vcmask 171008   ;;  %vm1832_vm4 = vcmask 220160  }
  0x92   : > { %v1256_v22 = vsel %vm987_vm9, %v1251_v17, %v1255_v7  ;;  %v2418_v17 = vld [vmem:[#allocation2 + $0x54] sm:$0xe]  ;;  %v1054_v19 = vor.u32 %v1053_v8, %v1049_v6  ;;  %v1082_v36 = vrot.slane %v1080_v24, 1  ;;  %v912_v6 = vld [vmem:[#allocation2 + $0x5c] sm:$0x1]  ;;  %v972_v8 = vunpack.c.l.b16 %v843_v0 }
  0x93   : > { %1605 = vrot.lane.b32.xlu2 %v1560_v42, %s2541_s27  ;;  %v1509_v42 = vshll.u32 %v1493_v35, 16 }
  0x94   : > { %1088 = vrot.lane.b32.xlu1 %v1023_v23, %s2536_s28  ;;  %v2410_v23 = vor.u32 %v2409_v10, %v2408_v54  ;;  %v1533_v54 = vshll.u32 %v1495_v46, 16 }
  0x96   : > { %1084 = vrot.lane.b32.xlu0 %v999_v31, %s2536_s28  ;;  %v2413_v31 = vor.u32 %v2412_v16, %v2934_v30  ;;  %v1387_v33 = vrot.slane %v2410_v23, 1  ;;  %v2414_v30 = vld [vmem:[#allocation2 + $0x3c] sm:$0xf0]  ;;  %v1535_v62 = vrot.slane %v1533_v54, 1  ;;  %v1075_v16 = vshll.u32 %v2972_v47, 16 }
  0x97   : > { %v2416_v18 = vor.u32 %v2415_v61, %v2414_v30  ;;  %v3002_v54 = vld [vmem:[#allocation2 + $0xc] sm:$0xf0] }
  0x98   : > { %v1381_v39 = vrot.slane %v2413_v31, 1  ;;  %v1536_v5 = vsel %vm987_vm9, %v2880_v11, %v1535_v62  ;;  %v1077_v23 = vrot.slane %v1075_v16, 1  ;;  %v879_v31 = vld [vmem:[#allocation2 + $0x50] sm:$0x1]  ;;  %v1490_v16 = vunpack.c.l.b16 %v912_v6 }
  0x99   : > { %v1140_v26 = vrot.slane %v2416_v18, 1  ;;  %v3023_v18 = vpack.c.b16 %v972_v8, %v972_v8 }
  0x9a   : > { %v1383_v44 = vsel %vm1124_vm8, %v1381_v39, %v1382_v40  ;;  %v881_v39 = vld [vmem:[#allocation2 + $0x68] sm:$0x1]  ;;  %v3031_v24 = vpack.c.b16 %v1490_v16, %v1490_v16  ;;  %v2430_v16 = vld [vmem:[#allocation2 + $0x6c] sm:$0xe] }
  0x9b   : > { %1153 = vrot.lane.b32.xlu2 %v1133_v1, %s2535_s23  ;;  %v2303_v1 = vor.u32 %v2302_v56, %v2301_v55  ;;  %v1236_v30 = vunpack.c.l.b16 %v881_v39 }
  0x9c   : > { %1149 = vrot.lane.b32.xlu1 %v1127_v49, %s2535_s23  ;;  %v1511_v49 = vrot.slane %v1509_v42, 1  ;;  %v1569_v39 = vshll.u32 %v3031_v24, 16 }
  0x9d   : > { %v1637_v10 = vrot.slane %v2303_v1, 1 }
  0x9e   : > { %1609 = vrot.lane.b32.xlu0 %v1584_v27, %s2541_s27  ;;  %v976_v27 = vunpack.c.l.b16 %v847_v50  ;;  %v1512_v37 = vsel %vm987_vm9, %v2922_v14, %v1511_v49  ;;  %v2296_v49 = vld [vmem:[#allocation2 + $0x48] sm:$0xe] }
  0xa0   : > { %v984_v3 = vpack.c.b16 %v976_v27, %v976_v27  ;;  %v901_v27 = vld [vmem:[#allocation2 + $0x54] sm:$0xff]  }
  0xa2   : > { %v1056_v9 = vshll.u32 %v984_v3, 16  ;;  %v1141_v28 = vrot.slane %v984_v3, 1  ;;  %v3011_v3 = vld [vmem:[#allocation2 + $0x24] sm:$0xff]  }
  0xa3   : > { %1205 = vrot.lane.b32.xlu2 %v2932_v29, %s2537_s19  ;;  %v1389_v29 = vsel %vm1124_vm8, %v1387_v33, %v1388_v34  ;;  %v2419_v34 = vor.u32 %v2418_v17, %v2417_v48 }
  0xa4   : > { %1673 = vrot.lane.b32.xlu1 %v1657_v4, %s2542_s26  ;;  %v1644_v4 = vrot.slane %v1495_v46, 1  ;;  %v1058_v20 = vrot.slane %v1056_v9, 1  ;;  %v1142_v40 = vsel %vm1124_vm8, %v1140_v26, %v1141_v28  ;;  %v2295_v46 = vld [vmem:[#allocation2 + $0x48] sm:$0xf0] }
  0xa5   : > { %v1146_v41 = vrot.slane %v2419_v34, 1  ;;  %v2297_v55 = vor.u32 %v2296_v49, %v2295_v46 }
  0xa6   : > { %1669 = vrot.lane.b32.xlu0 %v1651_v12, %s2542_s26  ;;  %v1638_v12 = vrot.slane %v1493_v35, 1  ;;  %v1059_v33 = vsel %vm987_vm9, %v1054_v19, %v1058_v20 }
  0xa7   : > { %v1396_v1 = vrot.slane %v2297_v55, 1  ;;  %v1571_v55 = vrot.slane %v1569_v39, 1 }
  0xa8   : > { %v1639_v21 = vsel %vm1124_vm8, %v1637_v10, %v1638_v12  ;;  %v845_v12 = vld [vmem:[#allocation2 + $0x2c] sm:$0x1] }
  0xab   : > { %1345 = vrot.lane.b32.xlu2 %v1280_v38, %s2538_s24  ;;  %v1234_v38 = vunpack.c.l.b16 %v879_v31 }
  0xac   : > { %1341 = vrot.lane.b32.xlu1 %v1256_v22, %s2538_s24  ;;  %v1073_v22 = vshrl.u32 %v2972_v47, 16 }
  0xae   : > { %1209 = vrot.lane.b32.xlu0 %v862_v53, %s2537_s19  ;;  %v2305_v53 = vld [vmem:[#allocation2 + $0x30] sm:$0xe]  ;;  %v1078_v35 = vor.u32 %v1077_v23, %v1073_v22  ;;  %v914_v22 = vld [vmem:[#allocation2 + $0x74] sm:$0x1]  ;;  %v1564_v23 = vshll.u32 %v901_v27, 16 }
  0xaf   : > { %v2306_v60 = vor.u32 %v2305_v53, %v2304_v51  ;;  %v1244_v51 = vpack.c.b16 %v1236_v30, %v1236_v30  ;;  %v3000_v53 = vld [vmem:[#allocation2 + $0xc] sm:$0xff]   ;;  %v1492_v34 = vunpack.c.l.b16 %v914_v22 }
  0xb0   : > { %v1083_v42 = vsel %vm987_vm9, %v1078_v35, %v1082_v36  ;;  %v1003_v19 = vshll.u32 %v3000_v53, 16  ;;  %v1001_v28 = vshrl.u32 %v3000_v53, 16  ;;  %v1027_v35 = vshll.u32 %v3011_v3, 16 }
  0xb1   : > { %v1643_v58 = vrot.slane %v2306_v60, 1  ;;  %v2299_v60 = vld [vmem:[#allocation2 + $0x60] sm:$0xe]  ;;  %v1337_v61 = vshll.u32 %v1244_v51, 16  ;;  %v1562_v36 = vshrl.u32 %v901_v27, 16  ;;  %v3040_v30 = vpack.c.b16 %v1492_v34, %v1492_v34 }
  0xb2   : > { %v1005_v31 = vrot.slane %v1003_v19, 1  ;;  %v1029_v46 = vrot.slane %v1027_v35, 1 }
  0xb3   : > { %1461 = vrot.lane.b32.xlu2 %v2899_v52, %s3416_s17  ;;  %v1645_v7 = vsel %vm1124_vm8, %v1643_v58, %v1644_v4  ;;  %v3013_v58 = vld [vmem:[#allocation2 + $0x24] sm:$0xf0]  ;;  %v1339_v9 = vrot.slane %v1337_v61, 1  ;;  %v1593_v0 = vshll.u32 %v3040_v30, 16 }
  0xb4   : > { %1409 = vrot.lane.b32.xlu1 %v1389_v29, %s2539_s29  ;;  %v1147_v29 = vrot.slane %v986_v15, 1  ;;  %v3020_v15 = vld [vmem:[#allocation2 + $0x6c] sm:$0xf0] }
  0xb6   : > { %1405 = vrot.lane.b32.xlu0 %v1383_v44, %s2539_s29  ;;  %v1242_v44 = vpack.c.b16 %v1234_v38, %v1234_v38  ;;  %v1148_v48 = vsel %vm1124_vm8, %v1146_v41, %v1147_v29  ;;  %v1566_v38 = vrot.slane %v1564_v23, 1  ;;  %v1006_v29 = vor.u32 %v1005_v31, %v1001_v28 }
  0xb8   : > { %v1313_v50 = vshll.u32 %v1242_v44, 16  ;;  %v1397_v2 = vrot.slane %v1242_v44, 1  ;;  %v1025_v44 = vshrl.u32 %v3011_v3, 16 }
  0xba   : > { %v1315_v56 = vrot.slane %v1313_v50, 1  ;;  %v1398_v10 = vsel %vm1124_vm8, %v1396_v1, %v1397_v2  ;;  %v2424_v50 = vld [vmem:[#allocation2 + $0xc] sm:$0xe]  ;;  %v1030_v1 = vor.u32 %v1029_v46, %v1025_v44  ;;  %v2217_v44 = vld [vmem:[%s3407_s3] sm:$0xff] }
  0xbb   : > { %1601 = vrot.lane.b32.xlu2 %v1536_v5, %s2541_s27 }
  0xbc   : > { %1597 = vrot.lane.b32.xlu1 %v1512_v37, %s2541_s27  ;;  %v2298_v37 = vld [vmem:[#allocation2 + $0x60] sm:$0xf0]  ;;  %v1316_v5 = vsel %vm987_vm9, %v2888_v25, %v1315_v56  ;;  %v1340_v25 = vsel %vm987_vm9, %v2941_v45, %v1339_v9 }
  0xbd   : > { %v2300_v4 = vor.u32 %v2299_v60, %v2298_v37 }
  0xbe   : > { %1465 = vrot.lane.b32.xlu0 %v2871_v57, %s3416_s17 }
  0xbf   : > { %v1402_v17 = vrot.slane %v2300_v4, 1  ;;  %v2427_v4 = vld [vmem:[#allocation2 + $0x54] sm:$0xe] }
  0xc0   : > { %v2428_v23 = vor.u32 %v2427_v4, %v3005_v59  ;;  %v2290_v4 = vld [vmem:[#allocation2 + $0x18] sm:$0xe] }
  0xc3   : > { %1094 = vrot.lane.b32.xlu2 %v1059_v33, %s2536_s28  ;;  %v1008_v33 = vshll.u32 %v3023_v18, 16 }
  0xc4   : > { %1665 = vrot.lane.b32.xlu1 %v1645_v7, %s2542_s26  ;;  %v1403_v7 = vrot.slane %v1244_v51, 1  ;;  %v1567_v51 = vor.u32 %v1566_v38, %v1562_v36  ;;  %v875_v36 = vld [vmem:[#allocation2 + $0x20] sm:$0x1] }
  0xc6   : > { %1661 = vrot.lane.b32.xlu0 %v1639_v21, %s2542_s26  ;;  %v974_v21 = vunpack.c.l.b16 %v845_v12  ;;  %v1404_v26 = vsel %vm1124_vm8, %v1402_v17, %v1403_v7  ;;  %v1572_v8 = vsel %vm987_vm9, %v1567_v51, %v1571_v55  ;;  %v2425_v12 = vor.u32 %v2424_v50, %v3002_v54  ;;  %v2218_v7 = vld [vmem:[%s3407_s3 + $0x8] sm:$0x30] }
  0xc7   : > { %v1659_v50 = vrot.slane %v3040_v30, 1  ;;  %v2289_v30 = vld [vmem:[#allocation2 + $0x18] sm:$0xf0] }
  0xc8   : > { %v982_v45 = vpack.c.b16 %v974_v21, %v974_v21  ;;  %v1128_v31 = vrot.slane %v2425_v12, 1  ;;  %v2291_v12 = vor.u32 %v2290_v4, %v2289_v30 }
  0xca   : > { %v1032_v49 = vshll.u32 %v982_v45, 16  ;;  %v1135_v19 = vrot.slane %v982_v45, 1 }
  0xcb   : > { %1163 = vrot.lane.b32.xlu2 %v1148_v48, %s2535_s23 }
  0xcc   : > { %1159 = vrot.lane.b32.xlu1 %v1142_v40, %s2535_s23  ;;  %v2421_v40 = vld [vmem:[#allocation2 + $0x24] sm:$0xe]  ;;  %v1034_v2 = vrot.slane %v1032_v49, 1 }
  0xcd   : > { %v3007_v62 = vpop.permute.xlu2 %1213  ;;  %v2422_v6 = vor.u32 %v2421_v40, %v3013_v58  ;;  %v2201_v58 = vld [vmem:[%s3407_s3 + $0x8] sm:$0xf]  ;;  %v1652_v40 = vrot.slane %v2428_v23, 1 }
  0xce   : > { %1098 = vrot.lane.b32.xlu0 %v1083_v42, %s2536_s28  ;;  %v1010_v42 = vrot.slane %v1008_v33, 1  ;;  %v2202_v21 = vor.u32 %v2218_v7, %v2201_v58  ;;  %v1129_v33 = vrot.slane %v3023_v18, 1  ;;  %v2292_v7 = vld [vmem:[#allocation2 + $0x30] sm:$0xf0] }
  0xcf   : > { %v1134_v17 = vrot.slane %v2422_v6, 1 }
  0xd0   : > { %v1011_v37 = vsel %vm987_vm9, %v1006_v29, %v1010_v42  ;;  %v1130_v59 = vsel %vm1124_vm8, %v1128_v31, %v1129_v33  ;;  %v2431_v29 = vor.u32 %v2430_v16, %v3020_v15  ;;  %v1230_v42 = vunpack.c.l.b16 %v875_v36 }
  0xd1   : > { %v1136_v39 = vsel %vm1124_vm8, %v1134_v17, %v1135_v19  ;;  %v2293_v19 = vld [vmem:[#allocation2 + $0x30] sm:$0xe] }
  0xd2   : > { %v1658_v15 = vrot.slane %v2431_v29, 1  ;;  %v1238_v51 = vpack.c.b16 %v1230_v42, %v1230_v42 }
  0xd3   : > { %1351 = vrot.lane.b32.xlu2 %v1316_v5, %s2538_s24 }
  0xd4   : > { %1219 = vrot.lane.b32.xlu1 %v2920_v13, %s2537_s19  ;;  %v905_v13 = vld [vmem:[#allocation2 + $0x6c] sm:$0xff]   ;;  %v1385_v23 = vrot.slane %v1238_v51, 1 }
  0xd5   : > { %v3028_v20 = vpop.permute.xlu2 %1217  ;;  %v1588_v41 = vshll.u32 %v905_v13, 16  ;;  %v1586_v60 = vshrl.u32 %v905_v13, 16 }
  0xd6   : > { %1215 = vrot.lane.b32.xlu0 %v2875_v63, %s2537_s19 }
  0xd7   : > { %v1590_v61 = vrot.slane %v1588_v41, 1  ;;  %v1653_v41 = vrot.slane %v3031_v24, 1 }
  0xd9   : > { %v1591_v9 = vor.u32 %v1590_v61, %v1586_v60  ;;  %v1654_v49 = vsel %vm1124_vm8, %v1652_v40, %v1653_v41  ;;  %v3097_v60 = vld [vmem:[#allocation2 + $0x3c] sm:$0xff]   ;;  %v2433_v41 = vld [vmem:[#allocation2 + $0x24] sm:$0xe] }
  0xda   : > { %v3099_v61 = vld [vmem:[#allocation2 + $0x3c] sm:$0xf0]  ;;  %v1538_v29 = vshrl.u32 %v3097_v60, 16 }
  0xdb   : > { %1419 = vrot.lane.b32.xlu2 %v1404_v26, %s2539_s29  ;;  %v2543_v26 = vmov 65535  }
  0xdc   : > { %1415 = vrot.lane.b32.xlu1 %v1398_v10, %s2539_s29  ;;  %v1595_v10 = vrot.slane %v1593_v0, 1  ;;  %v1851_v28 = vsel %vm1849_vm10, 4294967295, %v2543_v26  ;;  %v1660_v0 = vsel %vm1124_vm8, %v1658_v15, %v1659_v50 }
  0xdd   : > { %v3043_v48 = vpop.permute.xlu2 %1413  ;;  %v1852_v34 = vsel %vm1850_vm11, %v1851_v28, 0  ;;  %v2294_v28 = vor.u32 %v2293_v19, %v2292_v7 }
  0xde   : > { %1355 = vrot.lane.b32.xlu0 %v1340_v25, %s2538_s24  ;;  %v877_v25 = vld [vmem:[#allocation2 + $0x38] sm:$0x1]  ;;  %v1596_v22 = vsel %vm987_vm9, %v1591_v9, %v1595_v10  ;;  %v1854_v38 = vand.u32 %v2202_v21, %v1852_v34  ;;  %v893_v9 = vld [vmem:[#allocation2 + $0x24] sm:$0xff]  }
  0xdf   : > { %v1232_v45 = vunpack.c.l.b16 %v877_v25  ;;  %v3109_v10 = vld [vmem:[#allocation2 + $0x24] sm:$0xf0]  ;;  %v908_v25 = vld [vmem:[#allocation2 + $0x2c] sm:$0x1]  ;;  %v1514_v50 = vshrl.u32 %v893_v9, 16 }
  0xe0   : > { %2315 = vmatpush.bf16.msra.mxu3 %v1854_v38  ;;  %2314 = vmatpush.bf16.msra.mxu2 %v1854_v38  ;;  %v1486_v33 = vunpack.c.l.b16 %v908_v25 }
  0xe1   : > { %2313 = vmatpush.bf16.msra.mxu1 %v1854_v38  ;;  %1862 = vmatpush.bf16.msra.mxu0 %v1854_v38  ;;  %v3086_v46 = vpack.c.b16 %v1232_v45, %v1232_v45  ;;  %v1516_v38 = vshll.u32 %v893_v9, 16 }
  0xe2   : > { %v1494_v40 = vpack.c.b16 %v1486_v33, %v1486_v33 }
  0xe3   : > { %1086 = vrot.lane.b32.xlu2 %v1011_v37, %s2536_s28  ;;  %v1289_v37 = vshll.u32 %v3086_v46, 16 }
  0xe4   : > { %1475 = vrot.lane.b32.xlu1 %v905_v13, %s3416_s17  ;;  %2318 = vmatpush.bf16.msra.mxu3 %v2217_v44  ;;  %v1641_v7 = vrot.slane %v1494_v40, 1 }
  0xe5   : > { %v3058_v13 = vpop.permute.xlu2 %1473  ;;  %2317 = vmatpush.bf16.msra.mxu2 %v2217_v44  ;;  %2316 = vmatpush.bf16.msra.mxu1 %v2217_v44  ;;  %v1291_v6 = vrot.slane %v1289_v37, 1  ;;  %v1521_v37 = vshll.u32 %v1494_v40, 16 }
  0xe6   : > { %v3046_v56 = vpop.permute.xlu1 %1157  ;;  %1471 = vrot.lane.b32.xlu0 %v901_v27, %s3416_s17  ;;  %v1035_v27 = vsel %vm987_vm9, %v1030_v1, %v1034_v2  ;;  %1863 = vmatpush.bf16.msra.mxu0 %v2217_v44  ;;  %v1265_v1 = vshll.u32 %v1238_v51, 16  ;;  %v1518_v51 = vrot.slane %v1516_v38, 1 }
  0xe7   : > { %v1292_v58 = vsel %vm987_vm9, %v2880_v11, %v1291_v6  ;;  %v1540_v11 = vshll.u32 %v3097_v60, 16 }
  0xe8   : > { %v3051_v5 = vpop.permute.xlu0 %1092  ;;  %v1267_v16 = vrot.slane %v1265_v1, 1  ;;  %v2436_v1 = vld [vmem:[#allocation2 + $0x3c] sm:$0xe]  ;;  %v1519_v6 = vor.u32 %v1518_v51, %v1514_v50 }
  0xe9   : > { %v1542_v42 = vrot.slane %v1540_v11, 1  ;;  %v2437_v19 = vor.u32 %v2436_v1, %v3099_v61 }
  0xea   : > { %v1268_v26 = vsel %vm987_vm9, %v2922_v14, %v1267_v16  ;;  %v1391_v14 = vrot.slane %v3086_v46, 1 }
  0xeb   : > { %1611 = vrot.lane.b32.xlu2 %v1596_v22, %s2541_s27  ;;  %v1384_v22 = vrot.slane %v2291_v12, 1 }
  0xec   : > { %1607 = vrot.lane.b32.xlu1 %v1572_v8, %s2541_s27 }
  0xed   : > { %v3080_v18 = vpop.permute.xlu2 %1605  ;;  %v1386_v36 = vsel %vm1124_vm8, %v1384_v22, %v1385_v23  ;;  %v1646_v22 = vrot.slane %v2437_v19, 1 }
  0xee   : > { %v3067_v54 = vpop.permute.xlu1 %1161  ;;  %1090 = vrot.lane.b32.xlu0 %v1035_v27, %s2536_s28  ;;  %v910_v27 = vld [vmem:[#allocation2 + $0x44] sm:$0x1] }
  0xef   : > { %v1488_v21 = vunpack.c.l.b16 %v910_v27  ;;  %v1523_v27 = vrot.slane %v1521_v37, 1 }
  0xf0   : > { %v3073_v35 = vpop.permute.xlu0 %1096 }
  0xf1   : > { %v3120_v34 = vpack.c.b16 %v1488_v21, %v1488_v21  ;;  %v1691_v46 = vsel %vm1677_vm12, %v2875_v63, %v3073_v35  ;;  %v2434_v35 = vor.u32 %v2433_v41, %v3109_v10 }
  0xf3   : > { %1671 = vrot.lane.b32.xlu2 %v1654_v49, %s2542_s26  ;;  %v1545_v44 = vshll.u32 %v3120_v34, 16  ;;  %v1687_v49 = vsel %vm1677_vm12, %v2871_v57, %v3051_v5  ;;  %v1543_v5 = vor.u32 %v1542_v42, %v1538_v29  ;;  %v1647_v23 = vrot.slane %v3120_v34, 1 }
  0xf4   : > { %1155 = vrot.lane.b32.xlu1 %v1136_v39, %s2535_s23  ;;  %v1390_v39 = vrot.slane %v2294_v28, 1  ;;  %v1704_v30 = vsel %vm1694_vm13, %v1687_v49, %v3046_v56 }
  0xf5   : > { %v3102_v2 = vpop.permute.xlu2 %1153  ;;  %v1547_v4 = vrot.slane %v1545_v44, 1  ;;  %v1721_v12 = vsel %vm1711_vm14, %v1704_v30, %v3007_v62  ;;  %v1524_v62 = vsel %vm987_vm9, %v1519_v6, %v1523_v27  ;;  %v1648_v28 = vsel %vm1124_vm8, %v1646_v22, %v1647_v23 }
  0xf6   : > { %v3088_v24 = vpop.permute.xlu1 %1353  ;;  %1151 = vrot.lane.b32.xlu0 %v1130_v59, %s2535_s23  ;;  %v1392_v15 = vsel %vm1124_vm8, %v1390_v39, %v1391_v14  ;;  %s3433_s23 = smov 18  }
  0xf8   : > { %v3093_v55 = vpop.permute.xlu0 %1349 }
  0xf9   : > { %v1738_v16 = vsel %vm1728_vm15, %v1721_v12, %v3093_v55 }
  0xfb   : > { %1211 = vrot.lane.b32.xlu2 %v2871_v57, %s2537_s19  ;;  %v1708_v57 = vsel %vm1694_vm13, %v1691_v46, %v3067_v54 }
  0xfc   : > { %1207 = vrot.lane.b32.xlu1 %v2899_v52, %s2537_s19 }
  0xfd   : > { %v3117_v31 = vpop.permute.xlu2 %1205 }
  0xfe   : > { %v3106_v8 = vpop.permute.xlu1 %1469  ;;  %1675 = vrot.lane.b32.xlu0 %v1660_v0, %s2542_s26 }
 0x100   : > { %v1418_v17 = vpop.permute.xlu0 %1417 }
 0x103   : > { %1407 = vrot.lane.b32.xlu2 %v1386_v36, %s2539_s29 }
 0x104   : > { %1347 = vrot.lane.b32.xlu1 %v1292_v58, %s2538_s24  ;;  %v1548_v58 = vsel %vm987_vm9, %v1543_v5, %v1547_v4 }
 0x105   : > { %v3140_v0 = vpop.permute.xlu2 %1345 }
 0x106   : > { %v3123_v45 = vpop.permute.xlu1 %1088  ;;  %1343 = vrot.lane.b32.xlu0 %v1268_v26, %s2538_s24 }
 0x108   : > { %v3128_v59 = vpop.permute.xlu0 %1084 }
 0x109   : > { %v1679_v41 = vsel %vm1677_vm12, %v2903_v32, %v3128_v59 }
 0x10b   : > { %1467 = vrot.lane.b32.xlu2 %v3097_v60, %s3433_s23 }
 0x10c   : > { %1463 = vrot.lane.b32.xlu1 %v893_v9, %s3433_s23  ;;  %v1725_v9 = vsel %vm1711_vm14, %v1708_v57, %v3028_v20  ;;  %v1640_v20 = vrot.slane %v2434_v35, 1 }
 0x10d   : > { %v1742_v54 = vsel %vm1728_vm15, %v1725_v9, %v3088_v24  ;;  %v1462_v25 = vpop.permute.xlu2 %1461  ;;  %v1755_v24 = vsel %vm1745_vm0, %v1738_v16, %v3043_v48 }
 0x10e   : > { %v1150_v63 = vpop.permute.xlu1 %1149  ;;  %1411 = vrot.lane.b32.xlu0 %v1392_v15, %s2539_s29  ;;  %v1759_v10 = vsel %vm1745_vm0, %v1742_v54, %v1418_v17  ;;  %v1772_v55 = vsel %vm1762_vm1, %v1755_v24, %v3106_v8  ;;  %v1642_v61 = vsel %vm1124_vm8, %v1640_v20, %v1641_v7 }
 0x10f   : > { %v1776_v60 = vsel %vm1762_vm1, %v1759_v10, %v3058_v13  ;;  %v1789_v8 = vsel %vm1779_vm3, %v1772_v55, %v3080_v18  ;;  %v1683_v18 = vsel %vm1677_vm12, %v2899_v52, %v3123_v45  ;;  %v1696_v44 = vsel %vm1694_vm13, %v1679_v41, %v1150_v63 }
 0x110   : > { %v1610_v56 = vpop.permute.xlu0 %1609  ;;  %v1700_v40 = vsel %vm1694_vm13, %v1683_v18, %v3102_v2  ;;  %v1713_v52 = vsel %vm1711_vm14, %v1696_v44, %v3117_v31 }
 0x111   : > { %v1793_v17 = vsel %vm1779_vm3, %v1776_v60, %v1610_v56 }
 0x113   : > { %1663 = vrot.lane.b32.xlu2 %v1642_v61, %s2542_s26 }
 0x114   : > { %1603 = vrot.lane.b32.xlu1 %v1548_v58, %s2541_s27 }
 0x115   : > { %v1602_v33 = vpop.permute.xlu2 %1601 }
 0x116   : > { %v1674_v21 = vpop.permute.xlu1 %1673  ;;  %1599 = vrot.lane.b32.xlu0 %v1524_v62, %s2541_s27 }
 0x117   : > { %v1810_v48 = vsel %vm1796_vm2, %v1793_v17, %v1674_v21 }
 0x118   : > { %2209 = vmatmul.msk.bf16.vlgmr.msra.gmra.mxu3 %vm1832_vm4, %v1810_v48  ;;  %v1670_v26 = vpop.permute.xlu0 %1669 }
 0x119   : > { %v1806_v13 = vsel %vm1796_vm2, %v1789_v8, %v1670_v26 }
 0x11a   : > { %2207 = vmatmul.msk.bf16.vlgmr.msra.gmra.mxu2 %vm1832_vm4, %v1806_v13 }
 0x11d   : > { %v1095_v34 = vpop.permute.xlu2 %1094 }
 0x11e   : > { %v1342_v11 = vpop.permute.xlu1 %1341  ;;  %1667 = vrot.lane.b32.xlu0 %v1648_v28, %s2542_s26  ;;  %v1689_v56 = vsel %vm1677_vm12, %v2968_v43, %v1095_v34 }
 0x11f   : > { %v1730_v2 = vsel %vm1728_vm15, %v1713_v52, %v1342_v11 }
 0x120   : > { %v1210_v36 = vpop.permute.xlu0 %1209 }
 0x121   : > { %v1717_v29 = vsel %vm1711_vm14, %v1700_v40, %v1210_v36 }
 0x122   : > { %v1734_v46 = vsel %vm1728_vm15, %v1717_v29, %v3140_v0 }
 0x125   : > { %v1164_v14 = vpop.permute.xlu2 %1163 }
 0x126   : > { %v1410_v38 = vpop.permute.xlu1 %1409 }
 0x127   : > { %v1751_v45 = vsel %vm1745_vm0, %v1734_v46, %v1410_v38 }
 0x128   : > { %v1406_v39 = vpop.permute.xlu0 %1405 }
 0x129   : > { %v1747_v32 = vsel %vm1745_vm0, %v1730_v2, %v1406_v39 }
 0x12a   : > { %v1764_v37 = vsel %vm1762_vm1, %v1747_v32, %v1462_v25 }
 0x12d   : > { %v1352_v59 = vpop.permute.xlu2 %1351 }
 0x12e   : > { %v1598_v42 = vpop.permute.xlu1 %1597 }
 0x12f   : > { %v1781_v0 = vsel %vm1779_vm3, %v1764_v37, %v1598_v42 }
 0x130   : > { %v1466_v49 = vpop.permute.xlu0 %1465 }
 0x131   : > { %v1768_v15 = vsel %vm1762_vm1, %v1751_v45, %v1466_v49 }
 0x132   : > { %v1785_v51 = vsel %vm1779_vm3, %v1768_v15, %v1602_v33 }
 0x135   : > { %v1420_v5 = vpop.permute.xlu2 %1419 }
 0x136   : > { %v1666_v50 = vpop.permute.xlu1 %1665 }
 0x137   : > { %v1802_v1 = vsel %vm1796_vm2, %v1785_v51, %v1666_v50 }
 0x138   : > { %2205 = vmatmul.msk.bf16.vlgmr.msra.gmra.mxu1 %vm1832_vm4, %v1802_v1  ;;  %v1662_v31 = vpop.permute.xlu0 %1661 }
 0x139   : > { %v1798_v30 = vsel %vm1796_vm2, %v1781_v0, %v1662_v31  ;;  %v2401_v0 = vld [vmem:[%s3408_s4] ss:$0 sm:$0xff] }
 0x13a   : > { %2203 = vmatmul.msk.bf16.vlgmr.msra.gmra.mxu0 %vm1832_vm4, %v1798_v30 }
 0x13d   : > { %v1087_v6 = vpop.permute.xlu2 %1086 }
 0x13e   : > { %v1160_v57 = vpop.permute.xlu1 %1159  ;;  %v1681_v18 = vsel %vm1677_vm12, %v3000_v53, %v1087_v6 }
 0x13f   : > { %v1706_v16 = vsel %vm1694_vm13, %v1689_v56, %v1160_v57 }
 0x140   : > { %v1099_v4 = vpop.permute.xlu0 %1098 }
 0x141   : > { %v1693_v43 = vsel %vm1677_vm12, %v2972_v47, %v1099_v4 }
 0x142   : > { %v1710_v21 = vsel %vm1694_vm13, %v1693_v43, %v1164_v14 }
 0x145   : > { %v1612_v12 = vpop.permute.xlu2 %1611 }
 0x146   : > { %v1220_v63 = vpop.permute.xlu1 %1219 }
 0x147   : > { %v1727_v61 = vsel %vm1711_vm14, %v1710_v21, %v1220_v63 }
 0x148   : > { %v1216_v35 = vpop.permute.xlu0 %1215 }
 0x149   : > { %v1723_v10 = vsel %vm1711_vm14, %v1706_v16, %v1216_v35 }
 0x14a   : > { %v1740_v20 = vsel %vm1728_vm15, %v1723_v10, %v1352_v59 }
 0x14d   : > { %v1672_v62 = vpop.permute.xlu2 %1671 }
 0x14e   : > { %v1416_v27 = vpop.permute.xlu1 %1415 }
 0x14f   : > { %v1757_v7 = vsel %vm1745_vm0, %v1740_v20, %v1416_v27 }
 0x150   : > { %v1356_v9 = vpop.permute.xlu0 %1355 }
 0x151   : > { %v1744_v22 = vsel %vm1728_vm15, %v1727_v61, %v1356_v9 }
 0x152   : > { %v1761_v8 = vsel %vm1745_vm0, %v1744_v22, %v1420_v5 }
 0x155   : > { %v1212_v23 = vpop.permute.xlu2 %1211 }
 0x156   : > { %v1476_v54 = vpop.permute.xlu1 %1475 }
 0x157   : > { %v1778_v26 = vsel %vm1762_vm1, %v1761_v8, %v1476_v54 }
 0x158   : > { %v1472_v58 = vpop.permute.xlu0 %1471  ;;  %v1795_v28 = vsel %vm1779_vm3, %v1778_v26, %v1612_v12 }
 0x159   : > { %v1774_v19 = vsel %vm1762_vm1, %v1757_v7, %v1472_v58 }
 0x15d   : > { %v1408_v47 = vpop.permute.xlu2 %1407 }
 0x15e   : > { %v1608_v25 = vpop.permute.xlu1 %1607 }
 0x15f   : > { %v1791_v24 = vsel %vm1779_vm3, %v1774_v19, %v1608_v25 }
 0x160   : > { %v1091_v55 = vpop.permute.xlu0 %1090  ;;  %v1808_v60 = vsel %vm1796_vm2, %v1791_v24, %v1672_v62 }
 0x161   : > { %2208 = vmatmul.msk.bf16.gmra.mxu2 %vm1832_vm4, %v1808_v60  ;;  %v1685_v42 = vsel %vm1677_vm12, %v3011_v3, %v1091_v55 }
 0x165   : > { %v1468_v38 = vpop.permute.xlu2 %1467 }
 0x166   : > { %v1156_v17 = vpop.permute.xlu1 %1155 }
 0x167   : > { %v1702_v44 = vsel %vm1694_vm13, %v1685_v42, %v1156_v17 }
 0x168   : > { %v1152_v48 = vpop.permute.xlu0 %1151  ;;  %v1719_v2 = vsel %vm1711_vm14, %v1702_v44, %v1212_v23 }
 0x169   : > { %v1698_v14 = vsel %vm1694_vm13, %v1681_v18, %v1152_v48 }
 0x16d   : > { %v1664_v46 = vpop.permute.xlu2 %1663 }
 0x16e   : > { %v1208_v13 = vpop.permute.xlu1 %1207 }
 0x16f   : > { %v1715_v40 = vsel %vm1711_vm14, %v1698_v14, %v1208_v13 }
 0x170   : > { %v1676_v33 = vpop.permute.xlu0 %1675 }
 0x171   : > { %v1812_v11 = vsel %vm1796_vm2, %v1795_v28, %v1676_v33 }
 0x172   : > { %2210 = vmatmul.msk.bf16.gmra.mxu3 %vm1832_vm4, %v1812_v11 }
 0x176   : > { %v1348_v34 = vpop.permute.xlu1 %1347 }
 0x177   : > { %v1736_v32 = vsel %vm1728_vm15, %v1719_v2, %v1348_v34 }
 0x178   : > { %v1344_v36 = vpop.permute.xlu0 %1343 }
 0x179   : > { %v1732_v29 = vsel %vm1728_vm15, %v1715_v40, %v1344_v36 }
 0x17a   : > { %v1749_v49 = vsel %vm1745_vm0, %v1732_v29, %v1408_v47 }
 0x17e   : > { %v1464_v41 = vpop.permute.xlu1 %1463 }
 0x17f   : > { %v1766_v52 = vsel %vm1762_vm1, %v1749_v49, %v1464_v41 }
 0x180   : > { %v1412_v39 = vpop.permute.xlu0 %1411 }
 0x181   : > { %v1753_v3 = vsel %vm1745_vm0, %v1736_v32, %v1412_v39 }
 0x182   : > { %v1770_v50 = vsel %vm1762_vm1, %v1753_v3, %v1468_v38 }
 0x186   : > { %v1604_v59 = vpop.permute.xlu1 %1603 }
 0x187   : > { %v1787_v51 = vsel %vm1779_vm3, %v1770_v50, %v1604_v59 }
 0x188   : > { %v1600_v45 = vpop.permute.xlu0 %1599 }
 0x189   : > { %v1783_v53 = vsel %vm1779_vm3, %v1766_v52, %v1600_v45 }
 0x18a   : > { %v1800_v15 = vsel %vm1796_vm2, %v1783_v53, %v1664_v46 }
 0x18b   : > { %2204 = vmatmul.msk.bf16.gmra.mxu0 %vm1832_vm4, %v1800_v15 }
 0x190   : > { %v1668_v37 = vpop.permute.xlu0 %1667 }
 0x191   : > { %v1804_v1 = vsel %vm1796_vm2, %v1787_v51, %v1668_v37 }
 0x192   : > { %2206 = vmatmul.msk.bf16.gmra.mxu1 %vm1832_vm4, %v1804_v1 }
 0x19b   : > { %v1895_v31 = vpop.f32.mrf.mxu3 }
 0x19c   : > { %v3251_v30 = vadd.f32 %v2401_v0, %v1895_v31 }
 0x19d   : > { %v1885_v57 = vpop.f32.mrf.mxu2 }
 0x19e   : > { %v1917_v5 = vmax.f32 %v3251_v30, 0.0  ;;  %v1886_v4 = vadd.f32 %v2401_v0, %v1885_v57 }
 0x1a0   : > { %v1913_v63 = vmax.f32 %v1886_v4, 0.0 }
 0x1a3   : > { %v1897_v35 = vpop.f32.mrf.mxu3 }
 0x1a4   : > { %v1898_v6 = vadd.f32 %v2401_v0, %v1897_v35 }
 0x1a5   : > { %v1887_v27 = vpop.f32.mrf.mxu2 }
 0x1a6   : > { %v1918_v9 = vmax.f32 %v1898_v6, 0.0  ;;  %v1888_v12 = vadd.f32 %v2401_v0, %v1887_v27 }
 0x1a8   : > { %v1914_v56 = vmax.f32 %v1888_v12, 0.0 }
 0x1b5   : > { %v1875_v54 = vpop.f32.mrf.mxu1 }
 0x1b6   : > { %v1876_v16 = vadd.f32 %v2401_v0, %v1875_v54 }
 0x1b7   : > { %v1865_v58 = vpop.f32.mrf.mxu0 }
 0x1b8   : > { %v1909_v10 = vmax.f32 %v1876_v16, 0.0  ;;  %v1866_v20 = vadd.f32 %v2401_v0, %v1865_v58 }
 0x1ba   : > { %v1905_v7 = vmax.f32 %v1866_v20, 0.0 }
 0x1bd   : > { %v1877_v62 = vpop.f32.mrf.mxu1 }
 0x1be   : > { %v1878_v19 = vadd.f32 %v2401_v0, %v1877_v62 }
 0x1bf   : > { %v1867_v25 = vpop.f32.mrf.mxu0 }
 0x1c0   : > { %v1910_v24 = vmax.f32 %v1878_v19, 0.0  ;;  %v1868_v55 = vadd.f32 %v2401_v0, %v1867_v25 }
 0x1c2   : > { %v1906_v60 = vmax.f32 %v1868_v55, 0.0 }
 0x1e4   : > { %v1890_v43 = vpop.f32.mrf.mxu2 }
 0x1e5   : > { %v1891_v17 = vadd.f32 %v2401_v0, %v1890_v43 }
 0x1e7   : > { %v1915_v21 = vmax.f32 %v1891_v17, 0.0 }
 0x1ec   : > { %v1892_v61 = vpop.f32.mrf.mxu2 }
 0x1ed   : > { %v1893_v48 = vadd.f32 %v2401_v0, %v1892_v61 }
 0x1ef   : > { %v1916_v22 = vmax.f32 %v1893_v48, 0.0 }
 0x1f5   : > { %v1900_v23 = vpop.f32.mrf.mxu3 }
 0x1f6   : > { %v1901_v8 = vadd.f32 %v2401_v0, %v1900_v23 }
 0x1f8   : > { %v1919_v26 = vmax.f32 %v1901_v8, 0.0 }
 0x1fd   : > { %v1902_v13 = vpop.f32.mrf.mxu3 }
 0x1fe   : > { %v1903_v28 = vadd.f32 %v2401_v0, %v1902_v13 }
 0x200   : > { %v1920_v33 = vmax.f32 %v1903_v28, 0.0 }
 0x208   : > { %v1870_v11 = vpop.f32.mrf.mxu0 }
 0x209   : > { %v1871_v47 = vadd.f32 %v2401_v0, %v1870_v11 }
 0x20b   : > { %v1907_v36 = vmax.f32 %v1871_v47, 0.0 }
 0x20f   : > { %v1880_v34 = vpop.f32.mrf.mxu1 }
 0x210   : > { %v1881_v38 = vadd.f32 %v2401_v0, %v1880_v34  ;;  %v1872_v39 = vpop.f32.mrf.mxu0 }
 0x211   : > { %v1873_v18 = vadd.f32 %v2401_v0, %v1872_v39 }
 0x212   : > { %v1911_v14 = vmax.f32 %v1881_v38, 0.0 }
 0x213   : > { %v1908_v40 = vmax.f32 %v1873_v18, 0.0 }
 0x216   : > { %1924 = sbr.rel (%p2211_p6) target bundleno = 541 (0x21d), region = 68 }
 0x217   : > { %v1882_v41 = vpop.f32.mrf.mxu1 }
 0x218   : > { %v1883_v29 = vadd.f32 %v2401_v0, %v1882_v41 }
 0x21a   : > { %v1912_v42 = vmax.f32 %v1883_v29, 0.0 }
 0x21b   : > { %v2544_v44 = vmov 0.0  }
 0x21c   : > { %1925 = vst [vmem:[#allocation3] sm:$0x1] %v2544_v44 }
 0x21d PF: > { %v1927_v49 = vadd.f32 %v1906_v60, %v1905_v7  ;;  %p2212_p7 = scmp.ne.s32.totalorder %s2516_s12, 1 }
 0x21f   : > { %v1928_v46 = vadd.f32 %v1927_v49, %v1907_v36 }
 0x221   : > { %v1929_v52 = vadd.f32 %v1928_v46, %v1908_v40 }
 0x223   : > { %v1930_v45 = vadd.f32 %v1929_v52, %v1909_v10  ;;  %v1926_v6 = vld [vmem:[#allocation3] sm:$0x1] }
 0x225   : > { %v1931_v53 = vadd.f32 %v1930_v45, %v1910_v24 }
 0x227   : > { %v1932_v2 = vadd.f32 %v1931_v53, %v1911_v14 }
 0x229   : > { %v1933_v15 = vadd.f32 %v1932_v2, %v1912_v42 }
 0x22b   : > { %v1934_v32 = vadd.f32 %v1933_v15, %v1913_v63 }
 0x22d   : > { %v1935_v3 = vadd.f32 %v1934_v32, %v1914_v56 }
 0x22f   : > { %v1936_v59 = vadd.f32 %v1935_v3, %v1915_v21 }
 0x231   : > { %v1937_v50 = vadd.f32 %v1936_v59, %v1916_v22 }
 0x233   : > { %v1938_v51 = vadd.f32 %v1937_v50, %v1917_v5 }
 0x235   : > { %v1939_v37 = vadd.f32 %v1938_v51, %v1918_v9 }
 0x237   : > { %v1940_v1 = vadd.f32 %v1939_v37, %v1919_v26 }
 0x239   : > { %v1941_v0 = vadd.f32 %v1940_v1, %v1920_v33 }
 0x23b   : > { %v1942_v31 = vrot.slane %v1941_v0, 4 }
 0x23d   : > { %v1943_v30 = vadd.f32 %v1942_v31, %v1941_v0 }
 0x23f   : > { %v1944_v57 = vrot.slane %v1943_v30, 2 }
 0x241   : > { %v1945_v4 = vadd.f32 %v1944_v57, %v1943_v30 }
 0x243   : > { %v1946_v35 = vrot.slane %v1945_v4, 1 }
 0x245   : > { %v1947_v27 = vadd.f32 %v1946_v35, %v1945_v4  ;;  %1953 = sbr.rel (%p2212_p7) target bundleno = 875 (0x36b), region = 72 }
 0x247   : > { %v1948_v12 = vadd.f32 %v1947_v27, %v1926_v6 }
 0x249   : > { %1949 = vst [vmem:[#allocation3] sm:$0x1] %v1948_v12 }
 0x24a   : > { %v1971_v63 = vld [vmem:[%s3409_s5 + $0x78] sm:$0xff]  ;;  %v1970_v5 = vld [vmem:[%s3409_s5 + $0x70] sm:$0xff]  ;;  %v1969_v9 = vld [vmem:[%s3409_s5 + $0x68] sm:$0xff] }
 0x24b   : > { %1973 = vmatpush.msra.mxu0 %v1971_v63  ;;  %v1968_v56 = vld [vmem:[%s3409_s5 + $0x60] sm:$0xff]  ;;  %v2008_v54 = vld [vmem:[%s3411_s7 + $0x78] sm:$0xff]  ;;  %v2007_v58 = vld [vmem:[%s3411_s7 + $0x70] sm:$0xff] }
 0x24c   : > { %v1967_v16 = vld [vmem:[%s3409_s5 + $0x58] sm:$0xff]  ;;  %2010 = vmatpush.msra.mxu1 %v2008_v54  ;;  %v2006_v10 = vld [vmem:[%s3411_s7 + $0x68] sm:$0xff]  ;;  %v1966_v20 = vld [vmem:[%s3409_s5 + $0x50] sm:$0xff] }
 0x24d   : > { %1974 = vmatpush.msra.mxu0 %v1970_v5  ;;  %v2005_v7 = vld [vmem:[%s3411_s7 + $0x60] sm:$0xff]  ;;  %v1965_v62 = vld [vmem:[%s3409_s5 + $0x48] sm:$0xff]  ;;  %v2004_v19 = vld [vmem:[%s3411_s7 + $0x58] sm:$0xff] }
 0x24e   : > { %2011 = vmatpush.msra.mxu1 %v2007_v58  ;;  %v1964_v25 = vld [vmem:[%s3409_s5 + $0x40] sm:$0xff]  ;;  %v2003_v24 = vld [vmem:[%s3411_s7 + $0x50] sm:$0xff]  ;;  %v1963_v55 = vld [vmem:[%s3409_s5 + $0x38] sm:$0xff] }
 0x24f   : > { %1975 = vmatpush.msra.mxu0 %v1969_v9  ;;  %v2002_v60 = vld [vmem:[%s3411_s7 + $0x48] sm:$0xff]  ;;  %v1962_v43 = vld [vmem:[%s3409_s5 + $0x30] sm:$0xff]  ;;  %v2001_v17 = vld [vmem:[%s3411_s7 + $0x40] sm:$0xff] }
 0x250   : > { %2012 = vmatpush.msra.mxu1 %v2006_v10  ;;  %v1961_v21 = vld [vmem:[%s3409_s5 + $0x28] sm:$0xff]  ;;  %v2000_v61 = vld [vmem:[%s3411_s7 + $0x38] sm:$0xff]  ;;  %v1960_v48 = vld [vmem:[%s3409_s5 + $0x20] sm:$0xff] }
 0x251   : > { %1976 = vmatpush.msra.mxu0 %v1968_v56  ;;  %v1999_v22 = vld [vmem:[%s3411_s7 + $0x30] sm:$0xff]  ;;  %v1959_v23 = vld [vmem:[%s3409_s5 + $0x18] sm:$0xff]  ;;  %v1998_v8 = vld [vmem:[%s3411_s7 + $0x28] sm:$0xff] }
 0x252   : > { %2013 = vmatpush.msra.mxu1 %v2005_v7  ;;  %v1958_v26 = vld [vmem:[%s3409_s5 + $0x10] sm:$0xff]  ;;  %v1954_v13 = vld [vmem:[#allocation3] sm:$0x1]  ;;  %v1997_v28 = vld [vmem:[%s3411_s7 + $0x20] sm:$0xff] }
 0x253   : > { %1977 = vmatpush.msra.mxu0 %v1967_v16  ;;  %v1957_v33 = vld [vmem:[%s3409_s5 + $0x8] sm:$0xff]  ;;  %v1996_v11 = vld [vmem:[%s3411_s7 + $0x18] sm:$0xff]  ;;  %v1956_v47 = vld [vmem:[%s3409_s5] sm:$0xff]  ;;  %v1955_v36 = vmul.f32 0.00390625, %v1954_v13 }
 0x254   : > { %2014 = vmatpush.msra.mxu1 %v2004_v19  ;;  %v1995_v34 = vld [vmem:[%s3411_s7 + $0x10] sm:$0xff]  ;;  %v1994_v38 = vld [vmem:[%s3411_s7 + $0x8] sm:$0xff]  ;;  %v1993_v39 = vld [vmem:[%s3411_s7] sm:$0xff] }
 0x255   : > { %1978 = vmatpush.msra.mxu0 %v1966_v20  ;;  %v1972_v18 = vld [vmem:[%s3410_s6] sm:$0x1] }
 0x256   : > { %2015 = vmatpush.msra.mxu1 %v2003_v24  ;;  %v2009_v41 = vld [vmem:[%s3412_s8] sm:$0x1] }
 0x257   : > { %1979 = vmatpush.msra.mxu0 %v1965_v62 }
 0x258   : > { %2016 = vmatpush.msra.mxu1 %v2002_v60 }
 0x259   : > { %1980 = vmatpush.msra.mxu0 %v1964_v25 }
 0x25a   : > { %2017 = vmatpush.msra.mxu1 %v2001_v17 }
 0x25b   : > { %1981 = vmatpush.msra.mxu0 %v1963_v55 }
 0x25c   : > { %2018 = vmatpush.msra.mxu1 %v2000_v61 }
 0x25d   : > { %1982 = vmatpush.msra.mxu0 %v1962_v43 }
 0x25e   : > { %2019 = vmatpush.msra.mxu1 %v1999_v22 }
 0x25f   : > { %1983 = vmatpush.msra.mxu0 %v1961_v21 }
 0x260   : > { %2020 = vmatpush.msra.mxu1 %v1998_v8 }
 0x261   : > { %1984 = vmatpush.msra.mxu0 %v1960_v48 }
 0x262   : > { %2021 = vmatpush.msra.mxu1 %v1997_v28 }
 0x263   : > { %1985 = vmatpush.msra.mxu0 %v1959_v23 }
 0x264   : > { %2022 = vmatpush.msra.mxu1 %v1996_v11 }
 0x265   : > { %1986 = vmatpush.msra.mxu0 %v1958_v26 }
 0x266   : > { %2023 = vmatpush.msra.mxu1 %v1995_v34 }
 0x267   : > { %1987 = vmatpush.msra.mxu0 %v1957_v33 }
 0x268   : > { %2024 = vmatpush.msra.mxu1 %v1994_v38 }
 0x269   : > { %1988 = vmatpush.msra.mxu0 %v1956_v47 }
 0x26a   : > { %1989 = vmatmul.f32.vlgmr.msra.gmra.mxu0 %v1955_v36  ;;  %2025 = vmatpush.msra.mxu1 %v1993_v39 }
 0x2e7   : > { %v1990_v14 = vpop.f32.mrf.mxu0 }
 0x2e8   : > { %v1991_v40 = vadd.f32 %v1990_v14, %v1972_v18 }
 0x2ea   : > { %2026 = vmatmul.f32.vlgmr.msra.gmra.mxu1 %v1991_v40 }
 0x367   : > { %v2027_v29 = vpop.f32.mrf.mxu1 }
 0x368   : > { %v2028_v42 = vadd.f32 %v2027_v29, %v2009_v41 }
 0x36a   : > { %2030 = vst [vmem:[%s2849_s15] sm:$0x1] %v2028_v42 }
 0x36b PF: > { %s2040_s19 = scalar_lea.hbm %s3413_s9, %s2520_s13  ;;  %s2042_s24 = sshll.u32 %s2849_s15, 4  ;;  %s2043_s24 = int_to_ptr.vmem [resolvable:$true] %s2042_s24 }
 0x36c   : > { %s2044_s29 = sshll.u32 %s2040_s19, 4  ;;  %s3434_s27 = sand.u32 1, %s2508_s10   ;;  %s2045_s29 = int_to_ptr.hbm [resolvable:$true] %s2044_s29 }
 0x36d   : > { %s2032_s26 = scalar_lea.sflag [#allocation5], %s3434_s27  ;;  %s2452_s20 = sshra.s32 %s2045_s29, 4  ;;  %s2453_s20 = int_to_ptr.hbm [resolvable:$true] %s2452_s20 }
 0x36e   : > { %s2454_s18 = scalar_lea.hbm %s2453_s20, 1  ;;  %s2458_s17 = scalar_lea.hbm %s3413_s9, 2 }
 0x36f   : > { %p2455_p8 = scmp.ne.s32.totalorder %s2453_s20, %s2454_s18  ;;  %p2459_p12 = scmp.lt.s32.totalorder %s2453_s20, %s3413_s9 }
 0x370   : > { %p2460_p13 = scmp.lt.s32.totalorder %s2458_s17, %s2454_s18 }
 0x371   : > { %p2456_p10 = pnand %p2455_p8, %p2644_p3 }
 0x372   : > { %p2461_p0 = por %p2460_p13, %p2459_p12 }
 0x373   : > { %p2457_p11 = pneg %p2456_p10 }
 0x375   : > { %p2462_p1 = pnand %p2461_p0, %p2457_p11 }
 0x377   : > { %2465 = shalt.err (!%p2462_p1)
}
 0x378   : > { %2319 = dma.vmem_to_hbm [thread:$0]  (%p2644_p3), %s2043_s24, 16, %s2045_s29, %s2032_s26  }
 0x379 PF: > { %p2325_p2 = scmp.ge.s32.totalorder %s2532_s16, 2  ;;  %s2056_s13 = sand.u32 1, %s2504_s30  }
 0x37a   : > { %s2057_s15 = scalar_lea.sflag [#allocation5], %s2056_s13 }
 0x37b   : > { %p2322_p4 = pnand %p2325_p2, %p2654_p9 }
 0x37d   : > { %p2323_p5 = pneg %p2322_p4 }
 0x37f   : > { %2499 = dma.done.wait (%p2323_p5), %s2057_s15, 16  }
 0x380   : > { %2501 = vsyncadd (%p2323_p5), %s2057_s15, 4294967280  ;;  %s22_s16 = sadd.s32 1, %s2532_s16   ;;  %s3435_s13 = sld [smem:[#allocation7_spill]] }
 0x381   : > { %p19_p6 = scmp.ge.s32.totalorder %s22_s16, 6   ;;  %s3436_s21 = sld [smem:[#allocation8_spill]] }
 0x382   : > { %s3437_s15 = sld [smem:[#allocation9_spill]]  ;;  %s3438_s30 = smov %s2508_s10 }
 0x383   : > { %s3439_s10 = smov %s2512_s11  ;;  %s3440_s11 = smov %s2662_s25 }
 0x384   : > { %s3441_s12 = smov %s2524_s14  ;;  %21 = sbr.rel (!%p19_p6) target bundleno = 7 (0x7), region = 116 }
 0x387   : > { %s3442_s14 = smov %s3436_s21 }
 0x389   :  { %2062 = vsyncpa [#allocation5], 1 }
 0x38a   :  { %2064 = vsyncpa [#allocation5 + $0x1], 1 }

</bundles_post_ra>
